<compile_context>
chip_gen: v7x
topology: tpu7x:2x2x1
jax: 0.10.0
libtpu: 0.0.40
codegen_flags: <defaults>
</compile_context>

<pallas_src>
import functools

import jax
import jax.numpy as jnp
from jax import lax
from jax.experimental import pallas as pl
from jax.experimental.pallas import tpu as pltpu


# ----------------------------------------------------------------------------
# Fused kernel: st_gcn -> txpcnn tail -> PINN head (one program per sample)
# ----------------------------------------------------------------------------
def _st_pinn2_kernel(alpha_ref, x_ref, w_ref, fcsc_ref, pos_ref, out_ref,
                     scr1, scr2, *, cin, t_in, nv, cmid, pred, hid, off):
    f32 = jnp.float32
    TV = t_in * nv                       # stage-1/2 lane width (128)
    CV = cmid * nv                       # valid lanes of a stage-2 row (80)
    PV = pred * nv                       # stage-3 valid lane width (192)
    S3 = fcsc_ref.shape[-1]              # stage-3 padded lane width (256)

    def mm(a, b):
        return jnp.dot(a, b, preferred_element_type=f32)

    def prelu(x, alpha):
        return jnp.where(x >= 0, x, alpha * x)

    def wblk(name, rows, cols):          # static slice of the packed weight slab
        r0 = off[name]
        return w_ref[r0:r0 + rows, 0:cols]

    a_gcn, a_out, a_tp = alpha_ref[0], alpha_ref[1], alpha_ref[2]

    lane = lax.broadcasted_iota(jnp.int32, (1, TV), 1)
    lane3 = lax.broadcasted_iota(jnp.int32, (1, S3), 1)
    ones1 = jnp.ones((1, TV), f32)
    ones3 = jnp.ones((1, S3), f32)

    # ---------------- stage 1: st_gcn --------------------------------------
    x = x_ref[...]                                           # (cin, 128)
    # gcn 1x1 conv and residual 1x1 conv fused into one matmul (bias via ones row)
    z = mm(wblk('wgr', 2 * cmid, cin + 1), jnp.concatenate([x, ones1], axis=0))
    y, res = z[:cmid], z[cmid:]
    # block-diagonal graph matmul (128-deep contraction), folded gcn/BN1 bias
    p = prelu(mm(y, wblk('adj', TV, TV)) + wblk('gb', cmid, TV), a_gcn)

    # (3,1) temporal conv: 3 taps + bias fused into ONE (cmid, 3*cmid+1) matmul
    p_prev = jnp.where(lane >= nv, pltpu.roll(p, shift=nv, axis=1), 0.0)
    p_next = jnp.where(lane < TV - nv, pltpu.roll(p, shift=TV - nv, axis=1), 0.0)
    tcn = mm(wblk('wt', cmid, 3 * cmid + 1),
             jnp.concatenate([p_prev, p, p_next, ones1], axis=0))
    out1 = prelu(tcn + res, a_out)                           # (cmid, 128)

    # -------- torch .view(N, T, C, V): flat re-chunk via a flat scratch ----
    for c in range(cmid):                                    # 5 aligned row stores
        scr1[:, c * TV:(c + 1) * TV] = out1[c:c + 1, :]
    x2 = jnp.concatenate(                                    # 8 shifted window loads
        [scr1[:, CV * r: CV * r + TV] for r in range(t_in)], axis=0)
    x2 = jnp.where(lane < CV, x2, 0.0)                       # zero the pad h-lanes

    # ---------------- stage 2: tpcnns[0] + PReLU + 3x3 output conv ---------
    x2_prev = pltpu.roll(x2, shift=nv, axis=1)
    x2_next = pltpu.roll(x2, shift=TV - nv, axis=1)
    r1 = prelu(mm(wblk('w0', pred, 3 * t_in + 1),
                  jnp.concatenate([x2_prev, x2, x2_next, ones1], axis=0)), a_tp)
    r1 = jnp.where(lane < CV, r1, 0.0)                       # re-zero pad h-blocks

    not_lo = (lane % nv) != 0
    not_hi = (lane % nv) != nv - 1
    taps = []
    for kh in range(3):
        for kw in range(3):
            s = (-((kh - 1) * nv + (kw - 1))) % TV
            tap = pltpu.roll(r1, shift=s, axis=1) if s else r1
            if kw == 2:
                tap = jnp.where(not_hi, tap, 0.0)
            elif kw == 0:
                tap = jnp.where(not_lo, tap, 0.0)
            taps.append(tap)
    taps.append(ones1)                                       # bias row
    out2 = mm(wblk('w3', pred, 9 * pred + 1), jnp.concatenate(taps, axis=0))
    pos_ref[...] = out2                                      # lane-dense (12,128) store

    # -------- torch .view(N, C, PRED, V): only the rows the PINN head needs --
    for q in range(cmid):                                    # 5 stores of 80 lanes
        scr2[:, CV * q: CV * q + CV] = out2[q:q + 1, :CV]
    xy = jnp.concatenate([scr2[:, 0:S3], scr2[:, PV:PV + S3]], axis=0)
    xy = jnp.where(lane3 < PV, xy, 0.0)                      # (2, 256): normx / normy

    # ---------------- stage 3: PINN head ------------------------------------
    # TODO(synk): Dropout(0.5) inside fch is eval-mode identity (no RNG mask).
    h = jnp.tanh(mm(wblk('wxy', hid, 2), xy) + fcsc_ref[...])
    h_prev = pltpu.roll(h, shift=nv, axis=1)
    h_next = pltpu.roll(h, shift=S3 - nv, axis=1)
    h1 = jnp.tanh(mm(wblk('wh1', hid, 3 * hid + 1),
                     jnp.concatenate([h_prev, h, h_next, ones3], axis=0)))
    h1 = jnp.where(lane3 < PV, h1, 0.0)
    h1_prev = pltpu.roll(h1, shift=nv, axis=1)
    h1_next = pltpu.roll(h1, shift=S3 - nv, axis=1)
    h2 = jnp.tanh(mm(wblk('wh2', hid, 3 * hid + 1),
                     jnp.concatenate([h1_prev, h1, h1_next, ones3], axis=0)))
    out_ref[...] = mm(wblk('wfce', 2, hid + 1),
                      jnp.concatenate([h2, ones3], axis=0))  # lane-dense (2,256)


# ----------------------------------------------------------------------------
# Full st_pinn2 forward: host-side weight folding/packing + ONE pallas_call
# ----------------------------------------------------------------------------
def st_pinn2_forward(v, a, P, eps=1e-5):
    N, CIN, T, V = v.shape
    assert a.shape == (T, V, V)          # ConvTemporalGraphical kernel == seq_len
    f32 = jnp.float32
    TV = T * V
    CMID = P['gcn_w'].shape[0]           # output_feat (5)
    PRED = P['tp0_w'].shape[0]           # pred_seq_len (12)
    HID = P['fcs_w'].shape[0]            # PINN hidden (16)
    PV = PRED * V
    rup = lambda n: -(-n // 128) * 128
    S3 = rup(PV)                         # 256
    assert TV % 128 == 0 and CMID * V < TV

    # NOTE: eval-mode BN folding assumes running_mean=0, running_var=1 (fresh
    # init); trained running stats would have to be folded in here as well.
    def bn_scale(g):
        return g / jnp.sqrt(1.0 + eps)

    s1, s2, sr = bn_scale(P['bn1_g']), bn_scale(P['bn2_g']), bn_scale(P['bnr_g'])

    # ---- st_gcn: fold BNs, fuse gcn+residual, fuse the 3 tcn taps ----
    Wg = s1[:, None] * P['gcn_w']
    Wres = sr[:, None] * P['res_w']
    bres = sr * P['res_b'] + P['bnr_b']
    Wgr = jnp.zeros((2 * CMID, CIN + 1), f32)
    Wgr = Wgr.at[:CMID, :CIN].set(Wg)
    Wgr = Wgr.at[CMID:, :CIN].set(Wres).at[CMID:, CIN].set(bres)

    Abig = (a[:, :, None, :] * jnp.eye(T, dtype=f32)[:, None, :, None]
            ).reshape(TV, TV)                                 # block-diag adjacency
    gb = ((s1 * P['gcn_b'])[:, None] * jnp.sum(Abig, axis=0)[None, :]
          + P['bn1_b'][:, None])                              # gcn bias through A + BN1

    Wt = jnp.concatenate([s2[:, None] * P['tcn_w'][:, :, k] for k in range(3)]
                         + [(s2 * P['tcn_b'] + P['bn2_b'])[:, None]], axis=1)

    # ---- social_stgcnn tail: fuse the 3 h-taps and the 9 3x3 taps ----
    W0 = jnp.concatenate([P['tp0_w'][:, :, k] for k in range(3)]
                         + [P['tp0_b'][:, None]], axis=1)
    W3 = jnp.concatenate([P['tpo_w'][:, :, kh, kw]
                          for kh in range(3) for kw in range(3)]
                         + [P['tpo_b'][:, None]], axis=1)

    # ---- PINN head ----
    Wxy = P['fcs_w'][:, 1:3]
    Wh1 = jnp.concatenate([P['fch1_w'][:, :, k] for k in range(3)]
                          + [P['fch1_b'][:, None]], axis=1)
    Wh2 = jnp.concatenate([P['fch2_w'][:, :, k] for k in range(3)]
                          + [P['fch2_b'][:, None]], axis=1)
    Wfce = jnp.concatenate([P['fce_w'], P['fce_b'][:, None]], axis=1)

    l3 = jnp.arange(S3)
    tmask = (l3 // V < PRED).astype(f32)[None, :]
    tgrid = (l3 // V + 1).astype(f32)[None, :]                # linspace(1, PRED, PRED)
    fcs_const = (P['fcs_w'][:, 0:1] * tgrid + P['fcs_b'][:, None]) * tmask

    # ---- pack all constants into one 8-row-aligned (rows, 128) slab ----
    blocks = dict(wgr=Wgr, wt=Wt, gb=gb, w0=W0, w3=W3, wxy=Wxy,
                  wh1=Wh1, wh2=Wh2, wfce=Wfce, adj=Abig)
    off, rows = {}, 0
    for k, m in blocks.items():
        off[k] = rows
        rows += -(-m.shape[0] // 8) * 8
    wslab = jnp.zeros((rows, TV), f32)
    for k, m in blocks.items():
        wslab = wslab.at[off[k]:off[k] + m.shape[0], :m.shape[1]].set(m.astype(f32))

    alphas = jnp.stack([P['prelu1_a'], P['prelu_out_a'],
                        P['prelu_t_a']]).astype(f32)
    x = v.reshape(N, CIN, TV)

    s1_lanes = rup(CMID * V * (T - 1) + TV)                   # flat-view scratch 1
    s2_lanes = rup(max(CMID * CMID * V, PV + S3))             # flat-view scratch 2

    kernel = functools.partial(_st_pinn2_kernel, cin=CIN, t_in=T, nv=V,
                               cmid=CMID, pred=PRED, hid=HID, off=off)
    pos_slab, out_slab = pl.pallas_call(
        kernel,
        out_shape=(jax.ShapeDtypeStruct((N, PRED, TV), f32),
                   jax.ShapeDtypeStruct((N, 2, S3), f32)),
        grid=(N,),
        in_specs=[pl.BlockSpec(memory_space=pltpu.MemorySpace.SMEM),   # alphas
                  pl.BlockSpec((None, CIN, TV), lambda n: (n, 0, 0)),  # x (per sample)
                  pl.BlockSpec((rows, TV), lambda n: (0, 0)),          # weight slab
                  pl.BlockSpec((HID, S3), lambda n: (0, 0))],          # fcs constant
        out_specs=(pl.BlockSpec((None, PRED, TV), lambda n: (n, 0, 0)),
                   pl.BlockSpec((None, 2, S3), lambda n: (n, 0, 0))),
        scratch_shapes=[pltpu.VMEM((1, s1_lanes), f32),
                        pltpu.VMEM((1, s2_lanes), f32)],
        compiler_params=pltpu.CompilerParams(dimension_semantics=("parallel",)),
    )(alphas, x, wslab, fcs_const)

    # lane-dense slabs -> PyTorch output shapes (pure wrapper reshapes)
    v_pos = pos_slab[:, :, :CMID * V].reshape(N, CMID, PRED, V)
    v_out = jnp.transpose(out_slab[:, :, :PV].reshape(N, 2, PRED, V), (0, 2, 3, 1))
    return v_pos, v_out, a


# ----------------------------------------------------------------------------
# Deterministic parameter init (shapes from st_pinn2.__init__ with defaults)
# ----------------------------------------------------------------------------
def init_params(key):
    ks = list(jax.random.split(key, 24))

    def w(shape, scale=0.1):
        return scale * jax.random.normal(ks.pop(0), shape, dtype=jnp.float32)

    P = {}
    # st_gcn(2, 5, (3, 8))
    P['gcn_w'] = w((5, 2));  P['gcn_b'] = w((5,))
    P['bn1_g'] = 1.0 + w((5,)); P['bn1_b'] = w((5,))
    P['prelu1_a'] = jnp.float32(0.25)
    P['tcn_w'] = w((5, 5, 3)); P['tcn_b'] = w((5,))          # Conv2d(5,5,(3,1))
    P['bn2_g'] = 1.0 + w((5,)); P['bn2_b'] = w((5,))
    P['res_w'] = w((5, 2)); P['res_b'] = w((5,))             # residual Conv2d 1x1
    P['bnr_g'] = 1.0 + w((5,)); P['bnr_b'] = w((5,))
    P['prelu_out_a'] = jnp.float32(0.25)
    # social_stgcnn tail
    P['tp0_w'] = w((12, 8, 3)); P['tp0_b'] = w((12,))        # Conv2d(8,12,(3,1))
    P['prelu_t_a'] = jnp.float32(0.25)
    P['tpo_w'] = w((12, 12, 3, 3)); P['tpo_b'] = w((12,))    # Conv2d(12,12,3)
    # PINN head
    P['fcs_w'] = w((16, 3)); P['fcs_b'] = w((16,))           # Linear(3,16)
    P['fch1_w'] = w((16, 16, 3)); P['fch1_b'] = w((16,))     # Conv2d(16,16,(3,1))
    P['fch2_w'] = w((16, 16, 3)); P['fch2_b'] = w((16,))
    P['fce_w'] = w((2, 16)); P['fce_b'] = w((2,))            # Linear(16,2)
    return P


# ----------------------------------------------------------------------------
# Pure-JAX reference (un-folded, NCHW) for correctness check
# ----------------------------------------------------------------------------
def ref_forward(v, a, P, eps=1e-5):
    N, _, T, V = v.shape

    def bn(x, g, b):
        return x * (g / jnp.sqrt(1.0 + eps))[None, :, None, None] + b[None, :, None, None]

    def prelu(x, al):
        return jnp.where(x >= 0, x, al * x)

    def conv1x1(x, w, b):
        return jnp.einsum('oc,nctv->notv', w, x) + b[None, :, None, None]

    def tconv(x, w, b):
        k = w.shape[2]; p = (k - 1) // 2; Ti = x.shape[2]
        xp = jnp.pad(x, ((0, 0), (0, 0), (p, p), (0, 0)))
        out = sum(jnp.einsum('oc,nctv->notv', w[:, :, i], xp[:, :, i:i + Ti, :])
                  for i in range(k))
        return out + b[None, :, None, None]

    def conv3x3(x, w, b):
        H, W = x.shape[2], x.shape[3]
        xp = jnp.pad(x, ((0, 0), (0, 0), (1, 1), (1, 1)))
        out = 0
        for i in range(3):
            for j in range(3):
                out = out + jnp.einsum('oc,nchw->nohw', w[:, :, i, j],
                                       xp[:, :, i:i + H, j:j + W])
        return out + b[None, :, None, None]

    # st_gcn
    res = bn(conv1x1(v, P['res_w'], P['res_b']), P['bnr_g'], P['bnr_b'])
    x = conv1x1(v, P['gcn_w'], P['gcn_b'])
    x = jnp.einsum('nctv,tvw->nctw', x, a)
    x = prelu(bn(x, P['bn1_g'], P['bn1_b']), P['prelu1_a'])
    x = bn(tconv(x, P['tcn_w'], P['tcn_b']), P['bn2_g'], P['bn2_b'])
    x = prelu(x + res, P['prelu_out_a'])
    # social_stgcnn tail
    x = x.reshape(N, T, 5, V)
    x = prelu(tconv(x, P['tp0_w'], P['tp0_b']), P['prelu_t_a'])
    x = conv3x3(x, P['tpo_w'], P['tpo_b'])
    v_pos = x.reshape(N, 5, x.shape[1], V)
    pred = v_pos.shape[2]
    # PINN head
    vp = jnp.transpose(v_pos, (0, 2, 3, 1))
    normx, normy = vp[..., 0], vp[..., 1]
    Tg = jnp.broadcast_to(jnp.arange(1, pred + 1, dtype=jnp.float32)[None, :, None],
                          normx.shape)
    z = jnp.stack((Tg, normx, normy), axis=-1)
    h = jnp.tanh(jnp.einsum('ntvc,hc->ntvh', z, P['fcs_w']) + P['fcs_b'])
    h = jnp.transpose(h, (0, 3, 1, 2))
    h = jnp.tanh(tconv(h, P['fch1_w'], P['fch1_b']))
    h = jnp.tanh(tconv(h, P['fch2_w'], P['fch2_b']))
    h = jnp.transpose(h, (0, 2, 3, 1))
    out = jnp.einsum('ntvh,oh->ntvo', h, P['fce_w']) + P['fce_b']
    return v_pos, out, a


if __name__ == "__main__":
    key = jax.random.PRNGKey(0)
    kv, ka, kp = jax.random.split(key, 3)
    N, V, SEQ_LEN = 2, 16, 8
    v = jax.random.normal(kv, (N, 2, SEQ_LEN, V), dtype=jnp.float32)
    a = jax.random.normal(ka, (SEQ_LEN, V, V), dtype=jnp.float32)
    params = init_params(kp)

    v_pos, v_out, a_out = jax.jit(st_pinn2_forward)(v, a, params)
    jax.block_until_ready((v_pos, v_out, a_out))

    with jax.default_matmul_precision("float32"):      # exact-ish reference numerics
        r_pos, r_out, _ = ref_forward(v, a, params)

    assert v_pos.shape == (N, 5, 12, V) and v_out.shape == (N, 12, V, 2)
    err_pos = float(jnp.max(jnp.abs(v_pos - r_pos)))
    err_out = float(jnp.max(jnp.abs(v_out - r_out)))
    assert jnp.allclose(v_pos, r_pos, rtol=1e-2, atol=1e-2), err_pos
    assert jnp.allclose(v_out, r_out, rtol=1e-2, atol=1e-2), err_out
    print("KERNEL_OK")
</pallas_src>

<mosaic_0001>
module attributes {stable_mosaic.version = 11 : i64} {
  func.func @_st_pinn2_kernel(%arg0: i32, %arg1: memref<3xf32, #tpu.memory_space<smem>>, %arg2: memref<1x2x128xf32, #tpu.memory_space<vmem>>, %arg3: memref<248x128xf32, #tpu.memory_space<vmem>>, %arg4: memref<16x256xf32, #tpu.memory_space<vmem>>, %arg5: memref<1x12x128xf32, #tpu.memory_space<vmem>>, %arg6: memref<1x2x256xf32, #tpu.memory_space<vmem>>, %arg7: memref<1x768xf32, #tpu.memory_space<vmem>>, %arg8: memref<1x512xf32, #tpu.memory_space<vmem>>) attributes {dimension_semantics = [#tpu.dimension_semantics<parallel>], iteration_bounds = array<i64: 2>, scalar_prefetch = 0 : i64, scratch_operands = 2 : i64, tpu.core_type = #tpu.core_type<tc>, window_params = [{transform_indices = @transform_0, window_bounds = array<i64: 3>}, {transform_indices = @transform_1, window_bounds = array<i64: 1, 2, 128>}, {pipeline_mode = #tpu.pipeline_mode<synchronous>, transform_indices = @transform_2, window_bounds = array<i64: 248, 128>}, {pipeline_mode = #tpu.pipeline_mode<synchronous>, transform_indices = @transform_3, window_bounds = array<i64: 16, 256>}, {transform_indices = @transform_4, window_bounds = array<i64: 1, 12, 128>}, {transform_indices = @transform_5, window_bounds = array<i64: 1, 2, 256>}]} {
    %c0 = arith.constant 0 : index
    %0 = memref.load %arg1[%c0] : memref<3xf32, #tpu.memory_space<smem>>
    %c1 = arith.constant 1 : index
    %1 = memref.load %arg1[%c1] : memref<3xf32, #tpu.memory_space<smem>>
    %c2 = arith.constant 2 : index
    %2 = memref.load %arg1[%c2] : memref<3xf32, #tpu.memory_space<smem>>
    %3 = tpu.iota {dimensions = array<i32: 1>} : vector<1x128xi32>
    %4 = tpu.iota {dimensions = array<i32: 1>} : vector<1x256xi32>
    %cst = arith.constant 1.000000e+00 : f32
    %5 = vector.broadcast %cst : f32 to vector<1x128xf32>
    %cst_0 = arith.constant 1.000000e+00 : f32
    %6 = vector.broadcast %cst_0 : f32 to vector<1x256xf32>
    %c0_1 = arith.constant 0 : index
    %c0_2 = arith.constant 0 : index
    %c0_3 = arith.constant 0 : index
    %7 = vector.load %arg2[%c0_1, %c0_2, %c0_3] : memref<1x2x128xf32, #tpu.memory_space<vmem>>, vector<1x2x128xf32>
    %8 = vector.shape_cast %7 : vector<1x2x128xf32> to vector<2x128xf32>
    %c0_4 = arith.constant 0 : index
    %c0_5 = arith.constant 0 : index
    %9 = vector.load %arg3[%c0_4, %c0_5] : memref<248x128xf32, #tpu.memory_space<vmem>>, vector<10x3xf32>
    %10 = tpu.concatenate %8, %5 in 0 : vector<2x128xf32>, vector<1x128xf32> -> vector<3x128xf32>
    %cst_6 = arith.constant dense<0.000000e+00> : vector<10x128xf32>
    %11 = tpu.matmul %9, %10, %cst_6 {dimension_numbers = #tpu.dot_dimension_numbers<[1], [0], [0], [1], [0, 0, 1, 1], [], []>} : vector<10x3xf32>, vector<3x128xf32>, vector<10x128xf32> -> vector<10x128xf32>
    %12 = vector.extract_strided_slice %11 {offsets = [0, 0], sizes = [5, 128], strides = [1, 1]} : vector<10x128xf32> to vector<5x128xf32>
    %13 = vector.extract_strided_slice %11 {offsets = [5, 0], sizes = [5, 128], strides = [1, 1]} : vector<10x128xf32> to vector<5x128xf32>
    %c120 = arith.constant 120 : index
    %c0_7 = arith.constant 0 : index
    %14 = vector.load %arg3[%c120, %c0_7] : memref<248x128xf32, #tpu.memory_space<vmem>>, vector<128x128xf32>
    %cst_8 = arith.constant dense<0.000000e+00> : vector<5x128xf32>
    %15 = tpu.matmul %12, %14, %cst_8 {dimension_numbers = #tpu.dot_dimension_numbers<[1], [0], [0], [1], [0, 0, 1, 1], [], []>} : vector<5x128xf32>, vector<128x128xf32>, vector<5x128xf32> -> vector<5x128xf32>
    %c24 = arith.constant 24 : index
    %c0_9 = arith.constant 0 : index
    %16 = vector.load %arg3[%c24, %c0_9] : memref<248x128xf32, #tpu.memory_space<vmem>>, vector<5x128xf32>
    %17 = arith.addf %15, %16 : vector<5x128xf32>
    %cst_10 = arith.constant 0.000000e+00 : f32
    %18 = vector.broadcast %cst_10 : f32 to vector<5x128xf32>
    %19 = arith.cmpf oge, %17, %18 : vector<5x128xf32>
    %20 = vector.broadcast %0 : f32 to vector<5x128xf32>
    %21 = arith.mulf %20, %17 : vector<5x128xf32>
    %22 = arith.select %19, %17, %21 : vector<5x128xi1>, vector<5x128xf32>
    %c16_i32 = arith.constant 16 : i32
    %23 = vector.broadcast %c16_i32 : i32 to vector<1x128xi32>
    %24 = arith.cmpi sge, %3, %23 : vector<1x128xi32>
    %c16_i32_11 = arith.constant 16 : i32
    %25 = tpu.dynamic_rotate %22 by %c16_i32_11 dim 1 : vector<5x128xf32>, i32 -> vector<5x128xf32>
    %cst_12 = arith.constant 0.000000e+00 : f32
    %26 = vector.shape_cast %24 : vector<1x128xi1> to vector<1x128xi1>
    %27 = vector.broadcast %26 : vector<1x128xi1> to vector<5x128xi1>
    %28 = vector.broadcast %cst_12 : f32 to vector<5x128xf32>
    %29 = arith.select %27, %25, %28 : vector<5x128xi1>, vector<5x128xf32>
    %c112_i32 = arith.constant 112 : i32
    %30 = vector.broadcast %c112_i32 : i32 to vector<1x128xi32>
    %31 = arith.cmpi slt, %3, %30 : vector<1x128xi32>
    %c112_i32_13 = arith.constant 112 : i32
    %32 = tpu.dynamic_rotate %22 by %c112_i32_13 dim 1 : vector<5x128xf32>, i32 -> vector<5x128xf32>
    %cst_14 = arith.constant 0.000000e+00 : f32
    %33 = vector.shape_cast %31 : vector<1x128xi1> to vector<1x128xi1>
    %34 = vector.broadcast %33 : vector<1x128xi1> to vector<5x128xi1>
    %35 = vector.broadcast %cst_14 : f32 to vector<5x128xf32>
    %36 = arith.select %34, %32, %35 : vector<5x128xi1>, vector<5x128xf32>
    %c16 = arith.constant 16 : index
    %c0_15 = arith.constant 0 : index
    %37 = vector.load %arg3[%c16, %c0_15] : memref<248x128xf32, #tpu.memory_space<vmem>>, vector<5x16xf32>
    %38 = tpu.concatenate %29, %22, %36, %5 in 0 : vector<5x128xf32>, vector<5x128xf32>, vector<5x128xf32>, vector<1x128xf32> -> vector<16x128xf32>
    %cst_16 = arith.constant dense<0.000000e+00> : vector<5x128xf32>
    %39 = tpu.matmul %37, %38, %cst_16 {dimension_numbers = #tpu.dot_dimension_numbers<[1], [0], [0], [1], [0, 0, 1, 1], [], []>} : vector<5x16xf32>, vector<16x128xf32>, vector<5x128xf32> -> vector<5x128xf32>
    %40 = arith.addf %39, %13 : vector<5x128xf32>
    %cst_17 = arith.constant 0.000000e+00 : f32
    %41 = vector.broadcast %cst_17 : f32 to vector<5x128xf32>
    %42 = arith.cmpf oge, %40, %41 : vector<5x128xf32>
    %43 = vector.broadcast %1 : f32 to vector<5x128xf32>
    %44 = arith.mulf %43, %40 : vector<5x128xf32>
    %45 = arith.select %42, %40, %44 : vector<5x128xi1>, vector<5x128xf32>
    %46 = vector.extract_strided_slice %45 {offsets = [0, 0], sizes = [1, 128], strides = [1, 1]} : vector<5x128xf32> to vector<1x128xf32>
    %c0_18 = arith.constant 0 : index
    %c0_19 = arith.constant 0 : index
    %47 = vector.load %arg7[%c0_18, %c0_19] : memref<1x768xf32, #tpu.memory_space<vmem>>, vector<1x128xf32>
    tpu.vector_store %arg7[%c0_18, %c0_19], %46 {strides = array<i32>} : memref<1x768xf32, #tpu.memory_space<vmem>>, vector<1x128xf32>,
    %48 = vector.extract_strided_slice %45 {offsets = [1, 0], sizes = [1, 128], strides = [1, 1]} : vector<5x128xf32> to vector<1x128xf32>
    %c0_20 = arith.constant 0 : index
    %c128 = arith.constant 128 : index
    %49 = vector.load %arg7[%c0_20, %c128] : memref<1x768xf32, #tpu.memory_space<vmem>>, vector<1x128xf32>
    tpu.vector_store %arg7[%c0_20, %c128], %48 {strides = array<i32>} : memref<1x768xf32, #tpu.memory_space<vmem>>, vector<1x128xf32>,
    %50 = vector.extract_strided_slice %45 {offsets = [2, 0], sizes = [1, 128], strides = [1, 1]} : vector<5x128xf32> to vector<1x128xf32>
    %c0_21 = arith.constant 0 : index
    %c256 = arith.constant 256 : index
    %51 = vector.load %arg7[%c0_21, %c256] : memref<1x768xf32, #tpu.memory_space<vmem>>, vector<1x128xf32>
    tpu.vector_store %arg7[%c0_21, %c256], %50 {strides = array<i32>} : memref<1x768xf32, #tpu.memory_space<vmem>>, vector<1x128xf32>,
    %52 = vector.extract_strided_slice %45 {offsets = [3, 0], sizes = [1, 128], strides = [1, 1]} : vector<5x128xf32> to vector<1x128xf32>
    %c0_22 = arith.constant 0 : index
    %c384 = arith.constant 384 : index
    %53 = vector.load %arg7[%c0_22, %c384] : memref<1x768xf32, #tpu.memory_space<vmem>>, vector<1x128xf32>
    tpu.vector_store %arg7[%c0_22, %c384], %52 {strides = array<i32>} : memref<1x768xf32, #tpu.memory_space<vmem>>, vector<1x128xf32>,
    %54 = vector.extract_strided_slice %45 {offsets = [4, 0], sizes = [1, 128], strides = [1, 1]} : vector<5x128xf32> to vector<1x128xf32>
    %c0_23 = arith.constant 0 : index
    %c512 = arith.constant 512 : index
    %55 = vector.load %arg7[%c0_23, %c512] : memref<1x768xf32, #tpu.memory_space<vmem>>, vector<1x128xf32>
    tpu.vector_store %arg7[%c0_23, %c512], %54 {strides = array<i32>} : memref<1x768xf32, #tpu.memory_space<vmem>>, vector<1x128xf32>,
    %c0_24 = arith.constant 0 : index
    %c0_25 = arith.constant 0 : index
    %56 = vector.load %arg7[%c0_24, %c0_25] : memref<1x768xf32, #tpu.memory_space<vmem>>, vector<1x128xf32>
    %c0_26 = arith.constant 0 : index
    %c80 = arith.constant 80 : index
    %57 = vector.load %arg7[%c0_26, %c80] : memref<1x768xf32, #tpu.memory_space<vmem>>, vector<1x128xf32>
    %c0_27 = arith.constant 0 : index
    %c160 = arith.constant 160 : index
    %58 = vector.load %arg7[%c0_27, %c160] : memref<1x768xf32, #tpu.memory_space<vmem>>, vector<1x128xf32>
    %c0_28 = arith.constant 0 : index
    %c240 = arith.constant 240 : index
    %59 = vector.load %arg7[%c0_28, %c240] : memref<1x768xf32, #tpu.memory_space<vmem>>, vector<1x128xf32>
    %c0_29 = arith.constant 0 : index
    %c320 = arith.constant 320 : index
    %60 = vector.load %arg7[%c0_29, %c320] : memref<1x768xf32, #tpu.memory_space<vmem>>, vector<1x128xf32>
    %c0_30 = arith.constant 0 : index
    %c400 = arith.constant 400 : index
    %61 = vector.load %arg7[%c0_30, %c400] : memref<1x768xf32, #tpu.memory_space<vmem>>, vector<1x128xf32>
    %c0_31 = arith.constant 0 : index
    %c480 = arith.constant 480 : index
    %62 = vector.load %arg7[%c0_31, %c480] : memref<1x768xf32, #tpu.memory_space<vmem>>, vector<1x128xf32>
    %c0_32 = arith.constant 0 : index
    %c560 = arith.constant 560 : index
    %63 = vector.load %arg7[%c0_32, %c560] : memref<1x768xf32, #tpu.memory_space<vmem>>, vector<1x128xf32>
    %64 = tpu.concatenate %56, %57, %58, %59, %60, %61, %62, %63 in 0 : vector<1x128xf32>, vector<1x128xf32>, vector<1x128xf32>, vector<1x128xf32>, vector<1x128xf32>, vector<1x128xf32>, vector<1x128xf32>, vector<1x128xf32> -> vector<8x128xf32>
    %c80_i32 = arith.constant 80 : i32
    %65 = vector.broadcast %c80_i32 : i32 to vector<1x128xi32>
    %66 = arith.cmpi slt, %3, %65 : vector<1x128xi32>
    %cst_33 = arith.constant 0.000000e+00 : f32
    %67 = vector.shape_cast %66 : vector<1x128xi1> to vector<1x128xi1>
    %68 = vector.broadcast %67 : vector<1x128xi1> to vector<8x128xi1>
    %69 = vector.broadcast %cst_33 : f32 to vector<8x128xf32>
    %70 = arith.select %68, %64, %69 : vector<8x128xi1>, vector<8x128xf32>
    %c16_i32_34 = arith.constant 16 : i32
    %71 = tpu.dynamic_rotate %70 by %c16_i32_34 dim 1 : vector<8x128xf32>, i32 -> vector<8x128xf32>
    %c112_i32_35 = arith.constant 112 : i32
    %72 = tpu.dynamic_rotate %70 by %c112_i32_35 dim 1 : vector<8x128xf32>, i32 -> vector<8x128xf32>
    %c32 = arith.constant 32 : index
    %c0_36 = arith.constant 0 : index
    %73 = vector.load %arg3[%c32, %c0_36] : memref<248x128xf32, #tpu.memory_space<vmem>>, vector<12x25xf32>
    %74 = tpu.concatenate %71, %70, %72, %5 in 0 : vector<8x128xf32>, vector<8x128xf32>, vector<8x128xf32>, vector<1x128xf32> -> vector<25x128xf32>
    %cst_37 = arith.constant dense<0.000000e+00> : vector<12x128xf32>
    %75 = tpu.matmul %73, %74, %cst_37 {dimension_numbers = #tpu.dot_dimension_numbers<[1], [0], [0], [1], [0, 0, 1, 1], [], []>} : vector<12x25xf32>, vector<25x128xf32>, vector<12x128xf32> -> vector<12x128xf32>
    %cst_38 = arith.constant 0.000000e+00 : f32
    %76 = vector.broadcast %cst_38 : f32 to vector<12x128xf32>
    %77 = arith.cmpf oge, %75, %76 : vector<12x128xf32>
    %78 = vector.broadcast %2 : f32 to vector<12x128xf32>
    %79 = arith.mulf %78, %75 : vector<12x128xf32>
    %80 = arith.select %77, %75, %79 : vector<12x128xi1>, vector<12x128xf32>
    %c80_i32_39 = arith.constant 80 : i32
    %81 = vector.broadcast %c80_i32_39 : i32 to vector<1x128xi32>
    %82 = arith.cmpi slt, %3, %81 : vector<1x128xi32>
    %cst_40 = arith.constant 0.000000e+00 : f32
    %83 = vector.shape_cast %82 : vector<1x128xi1> to vector<1x128xi1>
    %84 = vector.broadcast %83 : vector<1x128xi1> to vector<12x128xi1>
    %85 = vector.broadcast %cst_40 : f32 to vector<12x128xf32>
    %86 = arith.select %84, %80, %85 : vector<12x128xi1>, vector<12x128xf32>
    %c16_i32_41 = arith.constant 16 : i32
    %c0_i32 = arith.constant 0 : i32
    %87 = arith.cmpi eq, %c16_i32_41, %c0_i32 : i32
    %c1_i32 = arith.constant 1 : i32
    %88 = arith.select %87, %c1_i32, %c16_i32_41 : i32
    %89 = vector.broadcast %88 : i32 to vector<1x128xi32>
    %90 = arith.remsi %3, %89 : vector<1x128xi32>
    %c0_i32_42 = arith.constant 0 : i32
    %91 = vector.broadcast %c0_i32_42 : i32 to vector<1x128xi32>
    %92 = arith.cmpi ne, %90, %91 : vector<1x128xi32>
    %c0_i32_43 = arith.constant 0 : i32
    %93 = vector.broadcast %c0_i32_43 : i32 to vector<1x128xi32>
    %94 = arith.cmpi slt, %90, %93 : vector<1x128xi32>
    %c0_i32_44 = arith.constant 0 : i32
    %95 = arith.cmpi slt, %88, %c0_i32_44 : i32
    %96 = vector.broadcast %95 : i1 to vector<1x128xi1>
    %97 = vector.broadcast %96 : vector<1x128xi1> to vector<1x128xi1>
    %98 = arith.xori %94, %97 : vector<1x128xi1>
    %99 = arith.andi %98, %92 : vector<1x128xi1>
    %100 = vector.broadcast %88 : i32 to vector<1x128xi32>
    %101 = arith.addi %90, %100 : vector<1x128xi32>
    %102 = arith.select %99, %101, %90 : vector<1x128xi1>, vector<1x128xi32>
    %c0_i32_45 = arith.constant 0 : i32
    %103 = vector.broadcast %c0_i32_45 : i32 to vector<1x128xi32>
    %104 = arith.cmpi ne, %102, %103 : vector<1x128xi32>
    %c16_i32_46 = arith.constant 16 : i32
    %c0_i32_47 = arith.constant 0 : i32
    %105 = arith.cmpi eq, %c16_i32_46, %c0_i32_47 : i32
    %c1_i32_48 = arith.constant 1 : i32
    %106 = arith.select %105, %c1_i32_48, %c16_i32_46 : i32
    %107 = vector.broadcast %106 : i32 to vector<1x128xi32>
    %108 = arith.remsi %3, %107 : vector<1x128xi32>
    %c0_i32_49 = arith.constant 0 : i32
    %109 = vector.broadcast %c0_i32_49 : i32 to vector<1x128xi32>
    %110 = arith.cmpi ne, %108, %109 : vector<1x128xi32>
    %c0_i32_50 = arith.constant 0 : i32
    %111 = vector.broadcast %c0_i32_50 : i32 to vector<1x128xi32>
    %112 = arith.cmpi slt, %108, %111 : vector<1x128xi32>
    %c0_i32_51 = arith.constant 0 : i32
    %113 = arith.cmpi slt, %106, %c0_i32_51 : i32
    %114 = vector.broadcast %113 : i1 to vector<1x128xi1>
    %115 = vector.broadcast %114 : vector<1x128xi1> to vector<1x128xi1>
    %116 = arith.xori %112, %115 : vector<1x128xi1>
    %117 = arith.andi %116, %110 : vector<1x128xi1>
    %118 = vector.broadcast %106 : i32 to vector<1x128xi32>
    %119 = arith.addi %108, %118 : vector<1x128xi32>
    %120 = arith.select %117, %119, %108 : vector<1x128xi1>, vector<1x128xi32>
    %c15_i32 = arith.constant 15 : i32
    %121 = vector.broadcast %c15_i32 : i32 to vector<1x128xi32>
    %122 = arith.cmpi ne, %120, %121 : vector<1x128xi32>
    %c17_i32 = arith.constant 17 : i32
    %123 = tpu.dynamic_rotate %86 by %c17_i32 dim 1 : vector<12x128xf32>, i32 -> vector<12x128xf32>
    %cst_52 = arith.constant 0.000000e+00 : f32
    %124 = vector.shape_cast %104 : vector<1x128xi1> to vector<1x128xi1>
    %125 = vector.broadcast %124 : vector<1x128xi1> to vector<12x128xi1>
    %126 = vector.broadcast %cst_52 : f32 to vector<12x128xf32>
    %127 = arith.select %125, %123, %126 : vector<12x128xi1>, vector<12x128xf32>
    %c16_i32_53 = arith.constant 16 : i32
    %128 = tpu.dynamic_rotate %86 by %c16_i32_53 dim 1 : vector<12x128xf32>, i32 -> vector<12x128xf32>
    %c15_i32_54 = arith.constant 15 : i32
    %129 = tpu.dynamic_rotate %86 by %c15_i32_54 dim 1 : vector<12x128xf32>, i32 -> vector<12x128xf32>
    %cst_55 = arith.constant 0.000000e+00 : f32
    %130 = vector.shape_cast %122 : vector<1x128xi1> to vector<1x128xi1>
    %131 = vector.broadcast %130 : vector<1x128xi1> to vector<12x128xi1>
    %132 = vector.broadcast %cst_55 : f32 to vector<12x128xf32>
    %133 = arith.select %131, %129, %132 : vector<12x128xi1>, vector<12x128xf32>
    %c1_i32_56 = arith.constant 1 : i32
    %134 = tpu.dynamic_rotate %86 by %c1_i32_56 dim 1 : vector<12x128xf32>, i32 -> vector<12x128xf32>
    %cst_57 = arith.constant 0.000000e+00 : f32
    %135 = vector.shape_cast %104 : vector<1x128xi1> to vector<1x128xi1>
    %136 = vector.broadcast %135 : vector<1x128xi1> to vector<12x128xi1>
    %137 = vector.broadcast %cst_57 : f32 to vector<12x128xf32>
    %138 = arith.select %136, %134, %137 : vector<12x128xi1>, vector<12x128xf32>
    %c127_i32 = arith.constant 127 : i32
    %139 = tpu.dynamic_rotate %86 by %c127_i32 dim 1 : vector<12x128xf32>, i32 -> vector<12x128xf32>
    %cst_58 = arith.constant 0.000000e+00 : f32
    %140 = vector.shape_cast %122 : vector<1x128xi1> to vector<1x128xi1>
    %141 = vector.broadcast %140 : vector<1x128xi1> to vector<12x128xi1>
    %142 = vector.broadcast %cst_58 : f32 to vector<12x128xf32>
    %143 = arith.select %141, %139, %142 : vector<12x128xi1>, vector<12x128xf32>
    %c113_i32 = arith.constant 113 : i32
    %144 = tpu.dynamic_rotate %86 by %c113_i32 dim 1 : vector<12x128xf32>, i32 -> vector<12x128xf32>
    %cst_59 = arith.constant 0.000000e+00 : f32
    %145 = vector.shape_cast %104 : vector<1x128xi1> to vector<1x128xi1>
    %146 = vector.broadcast %145 : vector<1x128xi1> to vector<12x128xi1>
    %147 = vector.broadcast %cst_59 : f32 to vector<12x128xf32>
    %148 = arith.select %146, %144, %147 : vector<12x128xi1>, vector<12x128xf32>
    %c112_i32_60 = arith.constant 112 : i32
    %149 = tpu.dynamic_rotate %86 by %c112_i32_60 dim 1 : vector<12x128xf32>, i32 -> vector<12x128xf32>
    %c111_i32 = arith.constant 111 : i32
    %150 = tpu.dynamic_rotate %86 by %c111_i32 dim 1 : vector<12x128xf32>, i32 -> vector<12x128xf32>
    %cst_61 = arith.constant 0.000000e+00 : f32
    %151 = vector.shape_cast %122 : vector<1x128xi1> to vector<1x128xi1>
    %152 = vector.broadcast %151 : vector<1x128xi1> to vector<12x128xi1>
    %153 = vector.broadcast %cst_61 : f32 to vector<12x128xf32>
    %154 = arith.select %152, %150, %153 : vector<12x128xi1>, vector<12x128xf32>
    %c48 = arith.constant 48 : index
    %c0_62 = arith.constant 0 : index
    %155 = vector.load %arg3[%c48, %c0_62] : memref<248x128xf32, #tpu.memory_space<vmem>>, vector<12x109xf32>
    %156 = tpu.concatenate %127, %128, %133, %138, %86, %143, %148, %149, %154, %5 in 0 : vector<12x128xf32>, vector<12x128xf32>, vector<12x128xf32>, vector<12x128xf32>, vector<12x128xf32>, vector<12x128xf32>, vector<12x128xf32>, vector<12x128xf32>, vector<12x128xf32>, vector<1x128xf32> -> vector<109x128xf32>
    %cst_63 = arith.constant dense<0.000000e+00> : vector<12x128xf32>
    %157 = tpu.matmul %155, %156, %cst_63 {dimension_numbers = #tpu.dot_dimension_numbers<[1], [0], [0], [1], [0, 0, 1, 1], [], []>} : vector<12x109xf32>, vector<109x128xf32>, vector<12x128xf32> -> vector<12x128xf32>
    %c0_64 = arith.constant 0 : index
    %c0_65 = arith.constant 0 : index
    %c0_66 = arith.constant 0 : index
    %158 = vector.load %arg5[%c0_64, %c0_65, %c0_66] : memref<1x12x128xf32, #tpu.memory_space<vmem>>, vector<1x12x128xf32>
    %159 = vector.shape_cast %158 : vector<1x12x128xf32> to vector<12x128xf32>
    %160 = vector.shape_cast %157 : vector<12x128xf32> to vector<1x12x128xf32>
    tpu.vector_store %arg5[%c0_64, %c0_65, %c0_66], %160 {strides = array<i32>} : memref<1x12x128xf32, #tpu.memory_space<vmem>>, vector<1x12x128xf32>,
    %161 = vector.extract_strided_slice %157 {offsets = [0, 0], sizes = [1, 80], strides = [1, 1]} : vector<12x128xf32> to vector<1x80xf32>
    %c0_67 = arith.constant 0 : index
    %c0_68 = arith.constant 0 : index
    %162 = vector.load %arg8[%c0_67, %c0_68] : memref<1x512xf32, #tpu.memory_space<vmem>>, vector<1x80xf32>
    tpu.vector_store %arg8[%c0_67, %c0_68], %161 {strides = array<i32>} : memref<1x512xf32, #tpu.memory_space<vmem>>, vector<1x80xf32>,
    %163 = vector.extract_strided_slice %157 {offsets = [1, 0], sizes = [1, 80], strides = [1, 1]} : vector<12x128xf32> to vector<1x80xf32>
    %c0_69 = arith.constant 0 : index
    %c80_70 = arith.constant 80 : index
    %164 = vector.load %arg8[%c0_69, %c80_70] : memref<1x512xf32, #tpu.memory_space<vmem>>, vector<1x80xf32>
    tpu.vector_store %arg8[%c0_69, %c80_70], %163 {strides = array<i32>} : memref<1x512xf32, #tpu.memory_space<vmem>>, vector<1x80xf32>,
    %165 = vector.extract_strided_slice %157 {offsets = [2, 0], sizes = [1, 80], strides = [1, 1]} : vector<12x128xf32> to vector<1x80xf32>
    %c0_71 = arith.constant 0 : index
    %c160_72 = arith.constant 160 : index
    %166 = vector.load %arg8[%c0_71, %c160_72] : memref<1x512xf32, #tpu.memory_space<vmem>>, vector<1x80xf32>
    tpu.vector_store %arg8[%c0_71, %c160_72], %165 {strides = array<i32>} : memref<1x512xf32, #tpu.memory_space<vmem>>, vector<1x80xf32>,
    %167 = vector.extract_strided_slice %157 {offsets = [3, 0], sizes = [1, 80], strides = [1, 1]} : vector<12x128xf32> to vector<1x80xf32>
    %c0_73 = arith.constant 0 : index
    %c240_74 = arith.constant 240 : index
    %168 = vector.load %arg8[%c0_73, %c240_74] : memref<1x512xf32, #tpu.memory_space<vmem>>, vector<1x80xf32>
    tpu.vector_store %arg8[%c0_73, %c240_74], %167 {strides = array<i32>} : memref<1x512xf32, #tpu.memory_space<vmem>>, vector<1x80xf32>,
    %169 = vector.extract_strided_slice %157 {offsets = [4, 0], sizes = [1, 80], strides = [1, 1]} : vector<12x128xf32> to vector<1x80xf32>
    %c0_75 = arith.constant 0 : index
    %c320_76 = arith.constant 320 : index
    %170 = vector.load %arg8[%c0_75, %c320_76] : memref<1x512xf32, #tpu.memory_space<vmem>>, vector<1x80xf32>
    tpu.vector_store %arg8[%c0_75, %c320_76], %169 {strides = array<i32>} : memref<1x512xf32, #tpu.memory_space<vmem>>, vector<1x80xf32>,
    %c0_77 = arith.constant 0 : index
    %c0_78 = arith.constant 0 : index
    %171 = vector.load %arg8[%c0_77, %c0_78] : memref<1x512xf32, #tpu.memory_space<vmem>>, vector<1x256xf32>
    %c0_79 = arith.constant 0 : index
    %c192 = arith.constant 192 : index
    %172 = vector.load %arg8[%c0_79, %c192] : memref<1x512xf32, #tpu.memory_space<vmem>>, vector<1x256xf32>
    %173 = tpu.concatenate %171, %172 in 0 : vector<1x256xf32>, vector<1x256xf32> -> vector<2x256xf32>
    %c192_i32 = arith.constant 192 : i32
    %174 = vector.broadcast %c192_i32 : i32 to vector<1x256xi32>
    %175 = arith.cmpi slt, %4, %174 : vector<1x256xi32>
    %cst_80 = arith.constant 0.000000e+00 : f32
    %176 = vector.shape_cast %175 : vector<1x256xi1> to vector<1x256xi1>
    %177 = vector.broadcast %176 : vector<1x256xi1> to vector<2x256xi1>
    %178 = vector.broadcast %cst_80 : f32 to vector<2x256xf32>
    %179 = arith.select %177, %173, %178 : vector<2x256xi1>, vector<2x256xf32>
    %c64 = arith.constant 64 : index
    %c0_81 = arith.constant 0 : index
    %180 = vector.load %arg3[%c64, %c0_81] : memref<248x128xf32, #tpu.memory_space<vmem>>, vector<16x2xf32>
    %cst_82 = arith.constant dense<0.000000e+00> : vector<16x256xf32>
    %181 = tpu.matmul %180, %179, %cst_82 {dimension_numbers = #tpu.dot_dimension_numbers<[1], [0], [0], [1], [0, 0, 1, 1], [], []>} : vector<16x2xf32>, vector<2x256xf32>, vector<16x256xf32> -> vector<16x256xf32>
    %c0_83 = arith.constant 0 : index
    %c0_84 = arith.constant 0 : index
    %182 = vector.load %arg4[%c0_83, %c0_84] : memref<16x256xf32, #tpu.memory_space<vmem>>, vector<16x256xf32>
    %183 = arith.addf %181, %182 : vector<16x256xf32>
    %184 = math.tanh %183 : vector<16x256xf32>
    %c16_i32_85 = arith.constant 16 : i32
    %185 = tpu.dynamic_rotate %184 by %c16_i32_85 dim 1 : vector<16x256xf32>, i32 -> vector<16x256xf32>
    %c240_i32 = arith.constant 240 : i32
    %186 = tpu.dynamic_rotate %184 by %c240_i32 dim 1 : vector<16x256xf32>, i32 -> vector<16x256xf32>
    %c80_86 = arith.constant 80 : index
    %c0_87 = arith.constant 0 : index
    %187 = vector.load %arg3[%c80_86, %c0_87] : memref<248x128xf32, #tpu.memory_space<vmem>>, vector<16x49xf32>
    %188 = tpu.concatenate %185, %184, %186, %6 in 0 : vector<16x256xf32>, vector<16x256xf32>, vector<16x256xf32>, vector<1x256xf32> -> vector<49x256xf32>
    %cst_88 = arith.constant dense<0.000000e+00> : vector<16x256xf32>
    %189 = tpu.matmul %187, %188, %cst_88 {dimension_numbers = #tpu.dot_dimension_numbers<[1], [0], [0], [1], [0, 0, 1, 1], [], []>} : vector<16x49xf32>, vector<49x256xf32>, vector<16x256xf32> -> vector<16x256xf32>
    %190 = math.tanh %189 : vector<16x256xf32>
    %c192_i32_89 = arith.constant 192 : i32
    %191 = vector.broadcast %c192_i32_89 : i32 to vector<1x256xi32>
    %192 = arith.cmpi slt, %4, %191 : vector<1x256xi32>
    %cst_90 = arith.constant 0.000000e+00 : f32
    %193 = vector.shape_cast %192 : vector<1x256xi1> to vector<1x256xi1>
    %194 = vector.broadcast %193 : vector<1x256xi1> to vector<16x256xi1>
    %195 = vector.broadcast %cst_90 : f32 to vector<16x256xf32>
    %196 = arith.select %194, %190, %195 : vector<16x256xi1>, vector<16x256xf32>
    %c16_i32_91 = arith.constant 16 : i32
    %197 = tpu.dynamic_rotate %196 by %c16_i32_91 dim 1 : vector<16x256xf32>, i32 -> vector<16x256xf32>
    %c240_i32_92 = arith.constant 240 : i32
    %198 = tpu.dynamic_rotate %196 by %c240_i32_92 dim 1 : vector<16x256xf32>, i32 -> vector<16x256xf32>
    %c96 = arith.constant 96 : index
    %c0_93 = arith.constant 0 : index
    %199 = vector.load %arg3[%c96, %c0_93] : memref<248x128xf32, #tpu.memory_space<vmem>>, vector<16x49xf32>
    %200 = tpu.concatenate %197, %196, %198, %6 in 0 : vector<16x256xf32>, vector<16x256xf32>, vector<16x256xf32>, vector<1x256xf32> -> vector<49x256xf32>
    %cst_94 = arith.constant dense<0.000000e+00> : vector<16x256xf32>
    %201 = tpu.matmul %199, %200, %cst_94 {dimension_numbers = #tpu.dot_dimension_numbers<[1], [0], [0], [1], [0, 0, 1, 1], [], []>} : vector<16x49xf32>, vector<49x256xf32>, vector<16x256xf32> -> vector<16x256xf32>
    %202 = math.tanh %201 : vector<16x256xf32>
    %c112 = arith.constant 112 : index
    %c0_95 = arith.constant 0 : index
    %203 = vector.load %arg3[%c112, %c0_95] : memref<248x128xf32, #tpu.memory_space<vmem>>, vector<2x17xf32>
    %204 = tpu.concatenate %202, %6 in 0 : vector<16x256xf32>, vector<1x256xf32> -> vector<17x256xf32>
    %cst_96 = arith.constant dense<0.000000e+00> : vector<2x256xf32>
    %205 = tpu.matmul %203, %204, %cst_96 {dimension_numbers = #tpu.dot_dimension_numbers<[1], [0], [0], [1], [0, 0, 1, 1], [], []>} : vector<2x17xf32>, vector<17x256xf32>, vector<2x256xf32> -> vector<2x256xf32>
    %c0_97 = arith.constant 0 : index
    %c0_98 = arith.constant 0 : index
    %c0_99 = arith.constant 0 : index
    %206 = vector.load %arg6[%c0_97, %c0_98, %c0_99] : memref<1x2x256xf32, #tpu.memory_space<vmem>>, vector<1x2x256xf32>
    %207 = vector.shape_cast %206 : vector<1x2x256xf32> to vector<2x256xf32>
    %208 = vector.shape_cast %205 : vector<2x256xf32> to vector<1x2x256xf32>
    tpu.vector_store %arg6[%c0_97, %c0_98, %c0_99], %208 {strides = array<i32>} : memref<1x2x256xf32, #tpu.memory_space<vmem>>, vector<1x2x256xf32>,
    return
  }
  func.func @transform_0(%arg0: i32) -> i32 {
    %c0_i32 = arith.constant 0 : i32
    %c0_i32_0 = arith.constant 0 : i32
    return %c0_i32 : i32
  }
  func.func @transform_1(%arg0: i32) -> (i32, i32, i32) {
    %c0_i32 = arith.constant 0 : i32
    %c0_i32_0 = arith.constant 0 : i32
    %c0_i32_1 = arith.constant 0 : i32
    return %arg0, %c0_i32, %c0_i32_0 : i32, i32, i32
  }
  func.func @transform_2(%arg0: i32) -> (i32, i32) {
    %c0_i32 = arith.constant 0 : i32
    %c0_i32_0 = arith.constant 0 : i32
    %c0_i32_1 = arith.constant 0 : i32
    return %c0_i32, %c0_i32_0 : i32, i32
  }
  func.func @transform_3(%arg0: i32) -> (i32, i32) {
    %c0_i32 = arith.constant 0 : i32
    %c0_i32_0 = arith.constant 0 : i32
    %c0_i32_1 = arith.constant 0 : i32
    return %c0_i32, %c0_i32_0 : i32, i32
  }
  func.func @transform_4(%arg0: i32) -> (i32, i32, i32) {
    %c0_i32 = arith.constant 0 : i32
    %c0_i32_0 = arith.constant 0 : i32
    %c0_i32_1 = arith.constant 0 : i32
    return %arg0, %c0_i32, %c0_i32_0 : i32, i32, i32
  }
  func.func @transform_5(%arg0: i32) -> (i32, i32, i32) {
    %c0_i32 = arith.constant 0 : i32
    %c0_i32_0 = arith.constant 0 : i32
    %c0_i32_1 = arith.constant 0 : i32
    return %arg0, %c0_i32, %c0_i32_0 : i32, i32, i32
  }
}

</mosaic_0001>

<bundles_post_ra>
// kernel: mul.69
= control target key start
LH: loop header
LB: loop body
LE: loop exit
PB: predicated region body
PF: predicated region fallthrough
CT: control target
= control target key end

     0   :  { %s67_s10 = smov 112   ;;  %s68_s11 = smov 80   ;;  %vm3_vm0 = vcmask 130048   ;;  %vm9_vm1 = vcmask 1048448   ;;  %vm15_vm2 = vcmask 917248   ;;  %vm21_vm3 = vcmask 786048   ;;  %s111_s0 = inlined_call_operand.vmem [shape: f32[8,16], index: 0, kind: input, shape index: {}]   ;;  %s112_s1 = inlined_call_operand.vmem [shape: f32[128], index: 1, kind: output, shape index: {}]  }
   0x1   :  { %v53_v0 = vld [vmem:[%s111_s0 + $0x7] sm:$0x1]   ;;  %v55_v1 = vld [vmem:[%s111_s0 + $0x5] sm:$0x1]   ;;  %v54_v2 = vld [vmem:[%s111_s0 + $0x6] sm:$0x1]  }
   0x2   :  { %7 = vrot.lane.b32.xlu0 %v53_v0, %s67_s10  ;;  %19 = vrot.lane.b32.xlu1 %v55_v1, %s68_s11  ;;  %v56_v3 = vld [vmem:[%s111_s0 + $0x4] sm:$0x1]   ;;  %v2_v4 = vld [vmem:[%s111_s0] sm:$0x1]   ;;  %s69_s18 = smov 96   ;;  %s70_s19 = smov 64  }
   0x3   :  { %4 = vst.msk [vmem:[#allocation0] sm:$0x1] %vm3_vm0, %v2_v4   ;;  %v57_v5 = vld [vmem:[%s111_s0 + $0x3] sm:$0x1]   ;;  %v58_v6 = vld [vmem:[%s111_s0 + $0x2] sm:$0x1]  }
   0x4   :  { %s71_s24 = smov 48   ;;  %s72_s25 = smov 32   ;;  %v59_v7 = vld [vmem:[%s111_s0 + $0x1] sm:$0x1]   ;;  %vm27_vm4 = vcmask 654848   ;;  %vm33_vm5 = vcmask 523648  }
   0x5   :  { %s73_s0 = smov 16   ;;  %vm39_vm6 = vcmask 392448   ;;  %vm45_vm7 = vcmask 261248  }
   0x6   :  { %13 = vrot.lane.b32.xlu0 %v54_v2, %s69_s18  ;;  %25 = vrot.lane.b32.xlu1 %v56_v3, %s70_s19 }
   0xa   :  { %31 = vrot.lane.b32.xlu0 %v57_v5, %s71_s24  ;;  %37 = vrot.lane.b32.xlu1 %v58_v6, %s72_s25 }
   0xe   :  { %43 = vrot.lane.b32.xlu0 %v59_v7, %s73_s0 }
  0x74   :  { %v8_v8 = vpop.permute.xlu0 %7   ;;  %v20_v9 = vpop.permute.xlu1 %19  }
  0x75   :  { %10 = vst.msk [vmem:[#allocation0] sm:$0x1] %vm9_vm1, %v8_v8  }
  0x78   :  { %v14_v10 = vpop.permute.xlu0 %13   ;;  %v26_v11 = vpop.permute.xlu1 %25  }
  0x79   :  { %16 = vst.msk [vmem:[#allocation0] sm:$0x1] %vm15_vm2, %v14_v10  }
  0x7a   :  { %22 = vst.msk [vmem:[#allocation0] sm:$0x1] %vm21_vm3, %v20_v9  }
  0x7b   :  { %28 = vst.msk [vmem:[#allocation0] sm:$0x1] %vm27_vm4, %v26_v11  }
  0x7c   :  { %v32_v12 = vpop.permute.xlu0 %31   ;;  %v38_v13 = vpop.permute.xlu1 %37  }
  0x7d   :  { %34 = vst.msk [vmem:[#allocation0] sm:$0x1] %vm33_vm5, %v32_v12  }
  0x7e   :  { %40 = vst.msk [vmem:[#allocation0] sm:$0x1] %vm39_vm6, %v38_v13  }
  0x80   :  { %v44_v14 = vpop.permute.xlu0 %43  }
  0x81   :  { %46 = vst.msk [vmem:[#allocation0] sm:$0x1] %vm45_vm7, %v44_v14  }
  0x88   :  { %v50_v15 = vld [vmem:[#allocation0] sm:$0x1] }
  0x89   :  { %52 = vst [vmem:[%s112_s1] sm:$0x1] %v50_v15 }

// kernel: st_pinn2_forward.1
= control target key start
LH: loop header
LB: loop body
LE: loop exit
PB: predicated region body
PF: predicated region fallthrough
CT: control target
= control target key end

     0   :  { %11 = vsyncpa [#allocation5], 0  ;;  %s2164_s18 = smov 0   ;;  %s2619_s0 = inlined_call_operand.vmem [shape: f32[3], index: 0, kind: input, shape index: {}]   ;;  %s2620_s1 = inlined_call_operand.vmem [shape: f32[2,2,128], index: 1, kind: input, shape index: {}]   ;;  %s2621_s2 = inlined_call_operand.vmem [shape: f32[248,128], index: 2, kind: input, shape index: {}]   ;;  %s2622_s3 = inlined_call_operand.vmem [shape: f32[16,256], index: 3, kind: input, shape index: {}]   ;;  %s2623_s4 = inlined_call_operand.vmem [shape: f32[2,12,128], index: 4, kind: output, shape index: {0}]   ;;  %s2624_s5 = inlined_call_operand.vmem [shape: f32[2,2,256], index: 5, kind: output, shape index: {1}]  }
   0x1 LB: > { %s2170_s19 = sadd.s32 4294967295, %s2112_s18   ;;  %p1640_p0 = scmp.ge.s32.totalorder %s2112_s18, 1  ;;  %s2112_s18 = sphi %s2164_s18, %s17_s18  }
   0x2   : > { %p163_p1 = scmp.lt.s32.totalorder %s2112_s18, 3  ;;  %s176_s22 = sshll.u32 %s2619_s0, 4  ;;  %s177_s22 = int_to_ptr.vmem [resolvable:$true] %s176_s22 }
   0x3   : > { %p1938_p3 = scmp.eq.s32.totalorder %s2170_s19, 0  ;;  %s2087_s24 = scalar_lea.vmem %s177_s22, 16 }
   0x4   : > { %p2177_p2 = pnand %p1640_p0, %p163_p1  ;;  %p2088_p6 = scmp.ne.s32.totalorder %s177_s22, %s2087_s24 }
   0x5   : > { %p2095_p10 = scmp.lt.s32.totalorder %s177_s22, %s177_s22  ;;  %p2096_p11 = scmp.lt.s32.totalorder %s2087_s24, %s2087_s24 }
   0x6   : > { %p1934_p4 = pneg %p2177_p2 }
   0x7   : > { %p2097_p12 = por %p2096_p11, %p2095_p10 }
   0x8   : > { %p1935_p5 = pnand %p1938_p3, %p1934_p4 }
   0xa   : > { %p2089_p7 = pneg %p1935_p5 }
   0xc   : > { %p2090_p8 = pnand %p2089_p7, %p2088_p6 }
   0xe   : > { %p2091_p9 = pneg %p2090_p8 }
  0x10   : > { %p2098_p13 = pnand %p2097_p12, %p2091_p9 }
  0x12   : > { %2101 = shalt.err (!%p2098_p13)
}
  0x13   : > { %s2114_s25 = smov [#allocation4]   ;;  %202 = sbr.rel (%p2177_p2) target bundleno = 3114 (0xc2a), region = 36 }
  0x14   : > { %1937 = dma.vmem_to_smem (!%p1935_p5), %s177_s22, 16, %s2114_s25, [#allocation5]  }
  0x1a   : > { %2107 = dma.done.wait (%p1938_p3), [#allocation5], 16  }
  0x1b   : > { %2109 = vsyncadd (%p1938_p3), [#allocation5], 4294967280 }
  0x1c   : > { %208 = sfence }
  0x1d   : > { %p235_p0 = scmp.lt.s32.totalorder %s2170_s19, 1  ;;  %v256_v0 = vld [vmem:[%s2621_s2] sm:$0xff]  ;;  %vm260_vm0 = vcmask 23552   ;;  %v2115_v1 = vmov 0.0|0.0   ;;  %v346_v2 = vld [vmem:[%s2621_s2 + $0x78] sm:$0xff]  ;;  %v348_v5 = vld [vmem:[%s2621_s2 + $0x88] sm:$0xff]  ;;  %v252_v42 = vlaneseq }
  0x1e   : > { %1737 = vmatprep.mubr.msk.f32.mxu0 %vm260_vm0, %v256_v0  ;;  %1824 = vmatprep.subr.bf16.mxu1 %v2115_v1  ;;  %v347_v3 = vld [vmem:[%s2621_s2 + $0x80] sm:$0xff]  ;;  %v349_v6 = vld [vmem:[%s2621_s2 + $0x90] sm:$0xff]  ;;  %vm258_vm1 = vcmask 1041408   ;;  %vm267_vm2 = vcmask 1042432   ;;  %v350_v8 = vld [vmem:[%s2621_s2 + $0x98] sm:$0xff]  ;;  %vm2116_vm3 = vmmov 0  }
  0x1f   : > { %s2645_s19 = smov (!%p235_p0, %s2170_s19), 1  ;;  %v1825_v4 = vpack.c.bf16 %v347_v3, %v346_v2  ;;  %v1828_v7 = vpack.c.bf16 %v349_v6, %v348_v5  ;;  %v351_v9 = vld [vmem:[%s2621_s2 + $0xa0] sm:$0xff]  ;;  %v257_v12 = vld [vmem:[%s2621_s2 + $0x8] sm:$0x3]  ;;  %v353_v15 = vld [vmem:[%s2621_s2 + $0xb0] sm:$0xff]  ;;  %v2117_v29 = vmov 0.0  }
  0x20   : > { %s1645_s11 = sshll.u32 %s2645_s19, 1  ;;  %v1831_v13 = vpack.c.bf16 %v351_v9, %v350_v8  ;;  %v352_v14 = vld [vmem:[%s2621_s2 + $0xa8] sm:$0xff]  ;;  %v354_v17 = vld [vmem:[%s2621_s2 + $0xb8] sm:$0xff]  ;;  %v355_v18 = vld [vmem:[%s2621_s2 + $0xc0] sm:$0xff]  ;;  %1772 = vmatprep.mubr.msk.f32.mxu1 %vm2116_vm3, %v2117_v29  ;;  %s249_s20 = sld [smem:[#allocation4]]  ;;  %v2269_v43 = vand.u32 127, %v252_v42 }
  0x21   : > { %1826 = vmatpush3.bf16.msra.mxu1 %v1825_v4  ;;  %s238_s14 = scalar_lea.vmem %s2620_s1, %s1645_s11  ;;  %v1834_v16 = vpack.c.bf16 %v353_v15, %v352_v14  ;;  %v1837_v19 = vpack.c.bf16 %v355_v18, %v354_v17  ;;  %v356_v20 = vld [vmem:[%s2621_s2 + $0xc8] sm:$0xff]  ;;  %v357_v21 = vld [vmem:[%s2621_s2 + $0xd0] sm:$0xff]  ;;  %v358_v23 = vld [vmem:[%s2621_s2 + $0xd8] sm:$0xff]  ;;  %s2118_s23 = smov 112   ;;  %vm459_vm7 = vcmask 1046528   ;;  %vm456_vm8 = vcmask 1044480  }
  0x22   : > { %1827 = vmatprep.subr.bf16.mxu1 %v2115_v1  ;;  %v255_v10 = vld [vmem:[%s238_s14] sm:$0x3]  ;;  %v1840_v22 = vpack.c.bf16 %v357_v21, %v356_v20  ;;  %v360_v26 = vld [vmem:[%s2621_s2 + $0xe8] sm:$0xff]  ;;  %v361_v27 = vld [vmem:[%s2621_s2 + $0xf0] sm:$0xff]  ;;  %s2119_s24 = smov 16   ;;  %vm443_vm5 = vcmp.lt.s32.totalorder %v2269_v43, 112 }
  0x23   : > { %v259_v11 = vsel %vm258_vm1, %v255_v10, 1.0  ;;  %v359_v24 = vld [vmem:[%s2621_s2 + $0xe0] sm:$0xff]  ;;  %v1846_v28 = vpack.c.bf16 %v361_v27, %v360_v26  ;;  %v362_v35 = vld [vmem:[%s2621_s2 + $0x18] sm:$0x1f]  ;;  %vm437_vm6 = vcmp.ge.s32.totalorder %v2269_v43, 16  ;;  %vm467_vm9 = vcmask 130048  }
  0x24   : > { %1735 = vmatprep.subr.msk.mxu0 %vm267_vm2, %v259_v11  ;;  %v1843_v25 = vpack.c.bf16 %v359_v24, %v358_v23  ;;  %v449_v54 = vld [vmem:[%s2621_s2 + $0x10] sm:$0x1f]  ;;  %s1650_s27 = sld [smem:[#allocation4 + $0x1]]  ;;  %v2120_v55 = vmov 1966171168   ;;  %v2283_v58 = vshrl.u32 %v252_v42, 7 }
  0x25   : > { %1829 = vmatpush3.bf16.msra.mxu1 %v1828_v7  ;;  %1736 = vmatpush3.msk.msra.mxu0 %vm267_vm2, %v259_v11  ;;  %v552_v56 = vunpack.c.l.s4 %v2120_v55  ;;  %vm547_vm11 = vcmp.lt.s32.totalorder %v252_v42, 128  ;;  %s2121_s28 = smov 48   ;;  %s2122_s29 = smov 96   ;;  %vm617_vm12 = vcmask 392192   ;;  %vm697_vm13 = vcmask 1040384  }
  0x26   : > { %1830 = vmatprep.subr.bf16.mxu1 %v2115_v1  ;;  %1738 = vmatmul.mubr.msk.f32.vlgmr.msra.gmra.mrb[0].mxu0 %vm260_vm0, %v257_v12  ;;  %v434_v37 = vstv %s249_s20  ;;  %v2295_v11 = vsub.s32 0, %v2283_v58  ;;  %v2298_v12 = vsub.s32 1, %v2283_v58  ;;  %s2123_s30 = smov 80   ;;  %s2124_s6 = smov 64   ;;  %vm633_vm14 = vcmask 785408  }
  0x27   : > { %1848 = vmatprep.subr.bf16.mxu0 %v2115_v1  ;;  %1779 = vmatprep.mubr.msk.f32.mxu0 %vm2116_vm3, %v2117_v29  ;;  %v553_v57 = vunpack.c.0.s8 %v552_v56  ;;  %s2125_s7 = smov 32   ;;  %vm655_vm15 = vcmask 523264   ;;  %vm701_vm0 = vcmask 1043456   ;;  %vm671_vm3 = vcmask 916480   ;;  %s1651_s12 = sld [smem:[#allocation4 + $0x2]] }
  0x28   : > { %s2128_s13 = smov 17   ;;  %s2129_s14 = smov 1  }
  0x29   : > { %1832 = vmatpush3.bf16.msra.mxu1 %v1831_v13  ;;  %v2286_v63 = vsub.s32 %v553_v57, %v2283_v58  ;;  %s2130_s15 = smov 15   ;;  %s2131_s16 = smov 127  }
  0x2a   : > { %1833 = vmatprep.subr.bf16.mxu1 %v2115_v1  ;;  %v542_v60 = vstv %s1650_s27  ;;  %s2132_s17 = smov 113   ;;  %s2133_s22 = smov 111  }
  0x2b   : > { %s1688_s27 = sshll.u32 %s2645_s19, 4 }
  0x2c   : > { %s243_s8 = scalar_lea.vmem %s2623_s4, %s1688_s27 }
  0x2d   : > { %1835 = vmatpush3.bf16.msra.mxu1 %v1834_v16 }
  0x2e   : > { %1836 = vmatprep.subr.bf16.mxu1 %v2115_v1 }
  0x31   : > { %1838 = vmatpush3.bf16.msra.mxu1 %v1837_v19 }
  0x32   : > { %1839 = vmatprep.subr.bf16.mxu1 %v2115_v1 }
  0x35   : > { %1841 = vmatpush3.bf16.msra.mxu1 %v1840_v22 }
  0x36   : > { %1842 = vmatprep.subr.bf16.mxu1 %v2115_v1 }
  0x39   : > { %1844 = vmatpush3.bf16.msra.mxu1 %v1843_v25 }
  0x3a   : > { %1845 = vmatprep.subr.bf16.mxu1 %v2115_v1 }
  0x3d   : > { %1847 = vmatpush3.bf16.msra.mxu1 %v1846_v28 }
  0xf9   : > { %v1739_v30 = vpop.f32.mrb[0].mxu0 }
  0xfa   : > { %v464_v31 = vrot.slane %v1739_v30, 5  ;;  %v337_v32 = vpop.f32.mrb[1].mxu0 }
  0xfb   : > { %v463_v33 = vrot.slane %v337_v32, 5  ;;  %1773 = vmatmul.mubr.f32.vlgmr.msra.gmra.mrb[0].mxu1 %v337_v32 }
  0xfc   : > { %1201 = vmatprep.mubr.f32.mxu1 %v2117_v29 }
  0xfd   : > { %v465_v34 = vsel %vm267_vm2, %v463_v33, %v464_v31 }
 0x1ce   : > { %v429_v36 = vpop.f32.mrb[0].mxu1 }
 0x1cf   : > { %v430_v38 = vadd.f32 %v429_v36, %v362_v35  ;;  %v1774_v39 = vpop.f32.mrb[1].mxu1 }
 0x1d1   : > { %v435_v40 = vmul.f32 %v434_v37, %v430_v38  ;;  %vm433_vm4 = vcmp.ge.f32.partialorder %v430_v38, 0.0 }
 0x1d3   : > { %v436_v41 = vsel %vm433_vm4, %v430_v38, %v435_v40  ;;  %vm678_vm4 = vcmask 261120  }
 0x1d4   : > { %444 = vrot.lane.b32.xlu0 %v436_v41, %s2118_s23  ;;  %v451_v46 = vrot.slane %v436_v41, 3 }
 0x1d8   : > { %438 = vrot.lane.b32.xlu0 %v436_v41, %s2119_s24 }
 0x246   : > { %v445_v44 = vpop.permute.xlu0 %444 }
 0x247   : > { %v448_v45 = vsel %vm443_vm5, %v445_v44, 0.0 }
 0x248   : > { %v454_v47 = vrot.slane %v448_v45, 6 }
 0x24a   : > { %v458_v48 = vsel %vm258_vm1, %v451_v46, %v454_v47  ;;  %v439_v49 = vpop.permute.xlu0 %438 }
 0x24b   : > { %v442_v50 = vsel %vm437_vm6, %v439_v49, 0.0  ;;  %v460_v51 = vsel %vm459_vm7, %v458_v48, 1.0  ;;  %vm694_vm6 = vcmask 654336  }
 0x24c   : > { %v457_v52 = vsel %vm456_vm8, %v442_v50, %v451_v46 }
 0x24d   : > { %v1849_v53 = vpack.c.bf16 %v460_v51, %v457_v52 }
 0x24f   : > { %1850 = vmatpush3.bf16.msra.mxu0 %v1849_v53 }
 0x252   : > { %1780 = vmatmul.mubr.msk.f32.vlgmr.msra.gmra.mrb[2].mxu0 %vm467_vm9, %v449_v54 }
 0x325   : > { %v537_v59 = vpop.f32.mrb[2].mxu0 }
 0x326   : > { %v538_v61 = vadd.f32 %v537_v59, %v465_v34  ;;  %v1781_v62 = vpop.f32.mrb[3].mxu0 }
 0x328   : > { %vm541_vm10 = vcmp.ge.f32.partialorder %v538_v61, 0.0  ;;  %v543_v0 = vmul.f32 %v542_v60, %v538_v61 }
 0x32a   : > { %v544_v1 = vsel %vm541_vm10, %v538_v61, %v543_v0  ;;  %vm704_vm10 = vcmask 1045504  }
 0x32b   : > { %549 = vst.msk [vmem:[#allocation2] sm:$0x1] %vm547_vm11, %v544_v1  ;;  %v557_v2 = vrot.slane %v544_v1, %v2286_v63  ;;  %v581_v3 = vcombine.high %v544_v1, %v544_v1 }
 0x32d   : > { %v558_v4 = vcombine.high %v557_v2, %v557_v2  ;;  %v565_v5 = vrot.slane %v557_v2, %v2286_v63  ;;  %v588_v6 = vrot.slane %v581_v3, %v2286_v63 }
 0x32f   : > { %v572_v7 = vrot.slane %v558_v4, %v2286_v63  ;;  %v575_v8 = vcombine.high %v565_v5, %v565_v5  ;;  %v595_v9 = vrot.slane %v588_v6, %v2286_v63  ;;  %v715_v4 = vld [vmem:[%s2621_s2 + $0x20] sm:$0xff] }
 0x331   : > { %574 = vst.msk [vmem:[#allocation2 + $0x1] sm:$0x1] %vm547_vm11, %v572_v7  ;;  %577 = vst.msk [vmem:[#allocation2 + $0x2] sm:$0x1] %vm547_vm11, %v575_v8  ;;  %v578_v10 = vcombine.high %v572_v7, %v572_v7 }
 0x332   : > { %597 = vst.msk [vmem:[#allocation2 + $0x4] sm:$0x1] %vm547_vm11, %v595_v9  ;;  %v598_v47 = vld [vmem:[#allocation2] sm:$0x1] }
 0x333   : > { %580 = vst.msk [vmem:[#allocation2 + $0x3] sm:$0x1] %vm547_vm11, %v578_v10  ;;  %vm2126_vm11 = vmmov 1  }
 0x338   : > { %v600_v13 = vld [vmem:[#allocation2 + $0x1] sm:$0x3] }
 0x339   : > { %v599_v14 = vld [vmem:[#allocation2] sm:$0x3]  ;;  %v624_v15 = vrot.slane %v600_v13, %v2295_v11  ;;  %v628_v16 = vrot.slane %v600_v13, %v2298_v12  ;;  %v603_v24 = vld [vmem:[#allocation2 + $0x4] sm:$0x3] }
 0x33a   : > { %v608_v17 = vrot.slane %v599_v14, %v2295_v11  ;;  %v612_v18 = vrot.slane %v599_v14, %v2298_v12  ;;  %v602_v19 = vld [vmem:[#allocation2 + $0x3] sm:$0x3]  ;;  %v685_v26 = vrot.slane %v603_v24, %v2295_v11  ;;  %v689_v27 = vrot.slane %v603_v24, %v2298_v12 }
 0x33b   : > { %v1978_v20 = vpack.i.bf16 %v628_v16, %v624_v15  ;;  %v662_v22 = vrot.slane %v602_v19, %v2295_v11  ;;  %v666_v23 = vrot.slane %v602_v19, %v2298_v12  ;;  %v601_v25 = vld [vmem:[#allocation2 + $0x2] sm:$0x3]  ;;  %v716_v19 = vld [vmem:[%s2621_s2 + $0x28] sm:$0xf] }
 0x33c   : > { %v1968_v21 = vpack.i.bf16 %v612_v18, %v608_v17  ;;  %v646_v30 = vrot.slane %v601_v25, %v2295_v11  ;;  %v650_v31 = vrot.slane %v601_v25, %v2298_v12  ;;  %v1998_v32 = vpack.i.bf16 %v689_v27, %v685_v26 }
 0x33d   : > { %1979 = vrot.lane.b32.xlu0 %v1978_v20, %s2119_s24  ;;  %v1988_v28 = vpack.i.bf16 %v666_v23, %v662_v22  ;;  %v2127_v17 = vmov 1.0  }
 0x33e   : > { %1969 = vrot.lane.b32.xlu1 %v1968_v21, %s2121_s28  ;;  %v1983_v33 = vpack.i.bf16 %v650_v31, %v646_v30 }
 0x341   : > { %1989 = vrot.lane.b32.xlu0 %v1988_v28, %s2118_s23 }
 0x342   : > { %1974 = vrot.lane.b32.xlu1 %v1978_v20, %s2122_s29  ;;  %v804_v20 = vstv %s1651_s12 }
 0x345   : > { %1999 = vrot.lane.b32.xlu0 %v1998_v32, %s2123_s30  ;;  %v873_v32 = vld [vmem:[%s2621_s2 + $0x30] sm:$0xff] }
 0x346   : > { %1984 = vrot.lane.b32.xlu1 %v1983_v33, %s2124_s6  ;;  %v815_v33 = vand.u32 15, %v2269_v43 }
 0x34a   : > { %1994 = vrot.lane.b32.xlu1 %v1988_v28, %s2125_s7 }
 0x3af   : > { %v1980_v34 = vpop.permute.xlu0 %1979 }
 0x3b0   : > { %v1970_v35 = vpop.permute.xlu1 %1969  ;;  %v1982_v45 = vunpack.i.h.bf16 %v1980_v34  ;;  %v1981_v46 = vunpack.i.l.bf16 %v1980_v34 }
 0x3b1   : > { %v1972_v36 = vunpack.i.h.bf16 %v1970_v35  ;;  %v1971_v37 = vunpack.i.l.bf16 %v1970_v35 }
 0x3b2   : > { %v640_v55 = vsel %vm467_vm9, %v1981_v46, %v1982_v45  ;;  %vm717_vm9 = vcmask 203776  }
 0x3b3   : > { %v618_v38 = vsel %vm617_vm12, %v1971_v37, %v1972_v36  ;;  %v1990_v39 = vpop.permute.xlu0 %1989  ;;  %1790 = vmatprep.mubr.msk.f32.mxu0 %vm717_vm9, %v715_v4 }
 0x3b4   : > { %v1975_v40 = vpop.permute.xlu1 %1974  ;;  %v698_v48 = vsel %vm697_vm13, %v598_v47, %v618_v38  ;;  %v1992_v56 = vunpack.i.h.bf16 %v1990_v39  ;;  %v1991_v57 = vunpack.i.l.bf16 %v1990_v39 }
 0x3b5   : > { %v1977_v41 = vunpack.i.h.bf16 %v1975_v40  ;;  %v1976_v44 = vunpack.i.l.bf16 %v1975_v40 }
 0x3b6   : > { %v672_v5 = vsel %vm671_vm3, %v1991_v57, %v1992_v56 }
 0x3b7   : > { %v634_v49 = vsel %vm633_vm14, %v1976_v44, %v1977_v41  ;;  %v2000_v52 = vpop.permute.xlu0 %1999  ;;  %vm1858_vm14 = vmpackc.low %vm697_vm13, %vm2126_vm11 }
 0x3b8   : > { %v699_v50 = vsel %vm258_vm1, %v698_v48, %v634_v49  ;;  %v1985_v51 = vpop.permute.xlu1 %1984  ;;  %v2002_v61 = vunpack.i.h.bf16 %v2000_v52  ;;  %v2001_v62 = vunpack.i.l.bf16 %v2000_v52 }
 0x3b9   : > { %v1987_v53 = vunpack.i.h.bf16 %v1985_v51  ;;  %v1986_v54 = vunpack.i.l.bf16 %v1985_v51  ;;  %v700_v60 = vsel %vm267_vm2, %v699_v50, %v640_v55  ;;  %vm707_vm2 = vcmp.lt.s32.totalorder %v2269_v43, 80 }
 0x3ba   : > { %v695_v8 = vsel %vm694_vm6, %v2001_v62, %v2002_v61  ;;  %vm1852_vm12 = vmpackc.low %vm707_vm2, %vm2126_vm11 }
 0x3bb   : > { %v656_v59 = vsel %vm655_vm15, %v1986_v54, %v1987_v53 }
 0x3bc   : > { %v702_v0 = vsel %vm701_vm0, %v700_v60, %v656_v59  ;;  %v1995_v1 = vpop.permute.xlu1 %1994 }
 0x3bd   : > { %v1997_v2 = vunpack.i.h.bf16 %v1995_v1  ;;  %v1996_v3 = vunpack.i.l.bf16 %v1995_v1  ;;  %v703_v7 = vsel %vm456_vm8, %v702_v0, %v672_v5 }
 0x3bf   : > { %v679_v6 = vsel %vm678_vm4, %v1996_v3, %v1997_v2 }
 0x3c0   : > { %v705_v9 = vsel %vm704_vm10, %v703_v7, %v679_v6  ;;  %vm908_vm10 = vcmask 891904  }
 0x3c1   : > { %v706_v10 = vsel %vm459_vm7, %v705_v9, %v695_v8 }
 0x3c2   : > { %v710_v13 = vsel %vm707_vm2, %v706_v10, 0.0 }
 0x3c3   : > { %713 = vrot.lane.b32.xlu0 %v710_v13, %s2118_s23  ;;  %711 = vrot.lane.b32.xlu1 %v710_v13, %s2119_s24 }
 0x435   : > { %v714_v14 = vpop.permute.xlu0 %713  ;;  %v712_v15 = vpop.permute.xlu1 %711 }
 0x436   : > { %v1851_v16 = vpack.c.bf16 %v706_v10, %v712_v15  ;;  %v1857_v18 = vpack.c.bf16 %v2127_v17, %v714_v14 }
 0x438   : > { %1853 = vmatprep.subr.msk.bf16.mxu0 %vm1852_vm12, %v1851_v16 }
 0x439   : > { %1856 = vmatpush3.bf16.msk.msra.mxu0 %vm1852_vm12, %v1851_v16  ;;  %vm2372_vm12 = vcmp.ne.s32.totalorder %v815_v33, 15 }
 0x43a   : > { %1859 = vmatprep.subr.msk.bf16.mxu0 %vm1858_vm14, %v1857_v18 }
 0x43d   : > { %1862 = vmatpush3.bf16.msk.msra.mxu0 %vm1858_vm14, %v1857_v18 }
 0x440   : > { %1791 = vmatmul.mubr.msk.f32.vlgmr.msra.gmra.mrb[4].mxu0 %vm717_vm9, %v716_v19  ;;  %vm2366_vm9 = vcmp.ne.s32.totalorder %v815_v33, 0  ;;  %v874_v33 = vld [vmem:[%s2621_s2 + $0x38] sm:$0xf] }
 0x441   : > { %1821 = vmatprep.mubr.msk.f32.mxu0 %vm908_vm10, %v873_v32  ;;  %vm1864_vm14 = vmpackc.low %vm2126_vm11, %vm2366_vm9 }
 0x513   : > { %v1792_v21 = vpop.f32.mrb[4].mxu0 }
 0x514   : > { %vm803_vm7 = vcmp.ge.f32.partialorder %v1792_v21, 0.0  ;;  %v806_v22 = vmul.f32 %v1792_v21, %v804_v20  ;;  %v793_v23 = vpop.f32.mrb[5].mxu0 }
 0x515   : > { %vm802_vm4 = vcmp.ge.f32.partialorder %v793_v23, 0.0  ;;  %v805_v24 = vmul.f32 %v804_v20, %v793_v23 }
 0x516   : > { %v808_v25 = vsel %vm803_vm7, %v1792_v21, %v806_v22  ;;  %vm2388_vm7 = vmpackc.low %vm2372_vm12, %vm2126_vm11 }
 0x517   : > { %v2346_v26 = vsel %vm707_vm2, %v808_v25, 0.0  ;;  %v2348_v27 = vsel %vm802_vm4, %v793_v23, %v805_v24  ;;  %vm1880_vm4 = vmpackc.low %vm2126_vm11, %vm707_vm2 }
 0x518   : > { %v809_v28 = vsel %vm707_vm2, %v2348_v27, 0.0  ;;  %vm1896_vm2 = vmpackc.low %vm456_vm8, %vm2372_vm12  ;;  %vm2444_vm8 = vcmp.ge.s32.totalorder %v252_v42, 80 }
 0x519   : > { %v2008_v30 = vpack.i.bf16 %v809_v28, %v2346_v26  ;;  %v2003_v31 = vpack.i.bf16 %v2346_v26, %v809_v28 }
 0x51b   : > { %2009 = vrot.lane.b32.xlu0 %v2008_v30, %s2128_s13  ;;  %2004 = vrot.lane.b32.xlu1 %v2003_v31, %s2119_s24 }
 0x51f   : > { %2014 = vrot.lane.b32.xlu0 %v2003_v31, %s2129_s14  ;;  %837 = vrot.lane.b32.xlu1 %v809_v28, %s2130_s15 }
 0x523   : > { %851 = vrot.lane.b32.xlu0 %v809_v28, %s2131_s16  ;;  %839 = vrot.lane.b32.xlu1 %v2346_v26, %s2130_s15 }
 0x527   : > { %857 = vrot.lane.b32.xlu0 %v809_v28, %s2132_s17  ;;  %853 = vrot.lane.b32.xlu1 %v2346_v26, %s2131_s16 }
 0x52b   : > { %859 = vrot.lane.b32.xlu0 %v2346_v26, %s2132_s17  ;;  %2019 = vrot.lane.b32.xlu1 %v2003_v31, %s2118_s23 }
 0x52f   : > { %867 = vrot.lane.b32.xlu0 %v809_v28, %s2133_s22  ;;  %869 = vrot.lane.b32.xlu1 %v2346_v26, %s2133_s22 }
 0x58d   : > { %v2010_v35 = vpop.permute.xlu0 %2009  ;;  %v2005_v36 = vpop.permute.xlu1 %2004 }
 0x58e   : > { %v2011_v37 = vunpack.i.l.bf16 %v2010_v35  ;;  %v2007_v38 = vunpack.i.h.bf16 %v2005_v36  ;;  %v2006_v39 = vunpack.i.l.bf16 %v2005_v36  ;;  %v2012_v45 = vunpack.i.h.bf16 %v2010_v35 }
 0x590   : > { %v832_v40 = vsel %vm2366_vm9, %v2011_v37, 0.0  ;;  %v878_v41 = vrot.slane %v2007_v38, 4  ;;  %v877_v44 = vrot.slane %v2006_v39, 4 }
 0x591   : > { %v2015_v46 = vpop.permute.xlu0 %2014  ;;  %v838_v47 = vpop.permute.xlu1 %837 }
 0x592   : > { %v903_v49 = vsel %vm701_vm0, %v832_v40, %v877_v44  ;;  %v2017_v50 = vunpack.i.h.bf16 %v2015_v46  ;;  %v2016_v51 = vunpack.i.l.bf16 %v2015_v46  ;;  %v879_v52 = vsel %vm701_vm0, %v877_v44, %v878_v41 }
 0x593   : > { %v1863_v53 = vpack.c.bf16 %v903_v49, %v2012_v45  ;;  %v1869_v60 = vpack.c.bf16 %v838_v47, %v879_v52 }
 0x594   : > { %v850_v54 = vsel %vm2366_vm9, %v2017_v50, 0.0  ;;  %v849_v55 = vsel %vm2366_vm9, %v2016_v51, 0.0 }
 0x595   : > { %v885_v57 = vrot.slane %v850_v54, 4  ;;  %v884_v59 = vrot.slane %v849_v55, 4  ;;  %v852_v61 = vpop.permute.xlu0 %851  ;;  %v840_v62 = vpop.permute.xlu1 %839  ;;  %1865 = vmatprep.subr.msk.bf16.mxu0 %vm1864_vm14, %v1863_v53 }
 0x596   : > { %v855_v0 = vsel %vm2372_vm12, %v852_v61, 0.0  ;;  %v844_v1 = vsel %vm2372_vm12, %v840_v62, 0.0  ;;  %1868 = vmatpush3.bf16.msk.msra.mxu0 %vm1864_vm14, %v1863_v53  ;;  %vm1886_vm14 = vmpackc.low %vm2366_vm9, %vm2126_vm11  ;;  %vm2449_vm11 = vcmp.lt.s32.totalorder %v252_v42, 160 }
 0x597   : > { %v891_v2 = vrot.slane %v855_v0, 4  ;;  %v886_v3 = vsel %vm701_vm0, %v884_v59, %v885_v57  ;;  %v904_v4 = vsel %vm701_vm0, %v844_v1, %v884_v59  ;;  %1871 = vmatprep.subr.msk.bf16.mxu0 %vm2388_vm7, %v1869_v60 }
 0x598   : > { %v1875_v5 = vpack.c.bf16 %v886_v3, %v904_v4  ;;  %v2497_v4 = vadd.s32 128, %v2269_v43 }
 0x599   : > { %v858_v6 = vpop.permute.xlu0 %857  ;;  %v854_v7 = vpop.permute.xlu1 %853  ;;  %v905_v8 = vsel %vm701_vm0, %v2346_v26, %v891_v2 }
 0x59a   : > { %v856_v9 = vsel %vm2372_vm12, %v854_v7, 0.0  ;;  %1874 = vmatpush3.bf16.msk.msra.mxu0 %vm2388_vm7, %v1869_v60  ;;  %v1879_v13 = vpack.c.bf16 %v905_v8, %v2348_v27  ;;  %vm2468_vm7 = vcmp.ge.s32.totalorder %v252_v42, 112 }
 0x59b   : > { %v892_v10 = vrot.slane %v856_v9, 4  ;;  %1876 = vmatprep.subr.bf16.mxu0 %v1875_v5 }
 0x59d   : > { %v2020_v14 = vpop.permute.xlu1 %2019  ;;  %v893_v15 = vsel %vm701_vm0, %v891_v2, %v892_v10  ;;  %v860_v16 = vpop.permute.xlu0 %859 }
 0x59e   : > { %v2022_v18 = vunpack.i.h.bf16 %v2020_v14  ;;  %v2021_v19 = vunpack.i.l.bf16 %v2020_v14  ;;  %1878 = vmatpush3.bf16.msra.mxu0 %v1875_v5  ;;  %v1885_v22 = vpack.c.bf16 %v858_v6, %v893_v15  ;;  %v862_v23 = vsel %vm2366_vm9, %v860_v16, 0.0 }
 0x59f   : > { %1881 = vmatprep.subr.msk.bf16.mxu0 %vm1880_vm4, %v1879_v13  ;;  %vm2458_vm9 = vcmp.ge.s32.totalorder %v252_v42, 32 }
 0x5a0   : > { %v899_v20 = vrot.slane %v2022_v18, 4  ;;  %v898_v21 = vrot.slane %v2021_v19, 4  ;;  %v1119_v18 = vld [vmem:[%s2621_s2 + $0x48] sm:$0xff] }
 0x5a1   : > { %v870_v24 = vpop.permute.xlu1 %869  ;;  %v868_v31 = vpop.permute.xlu0 %867  ;;  %v1121_v19 = vld [vmem:[%s2622_s3 + $0x8] sm:$0xff] }
 0x5a2   : > { %1884 = vmatpush3.bf16.msk.msra.mxu0 %vm1880_vm4, %v1879_v13  ;;  %v900_v25 = vsel %vm701_vm0, %v898_v21, %v899_v20  ;;  %v906_v26 = vsel %vm701_vm0, %v862_v23, %v898_v21  ;;  %v872_v27 = vsel %vm2372_vm12, %v870_v24, 0.0  ;;  %vm2463_vm12 = vcmp.lt.s32.totalorder %v252_v42, 112  ;;  %v1122_v24 = vld [vmem:[%s2622_s3 + $0x10] sm:$0xff] }
 0x5a3   : > { %1887 = vmatprep.subr.msk.bf16.mxu0 %vm1886_vm14, %v1885_v22  ;;  %v1891_v28 = vpack.c.bf16 %v900_v25, %v906_v26  ;;  %v907_v30 = vsel %vm701_vm0, %v872_v27, 1.0  ;;  %vm995_vm0 = vcmp.lt.s32.totalorder %v252_v42, 80  ;;  %vm2473_vm4 = vcmp.lt.s32.totalorder %v252_v42, 192  ;;  %v1123_v25 = vld [vmem:[%s2622_s3 + $0x18] sm:$0xff] }
 0x5a4   : > { %v1895_v32 = vpack.c.bf16 %v907_v30, %v868_v31 }
 0x5a6   : > { %1890 = vmatpush3.bf16.msk.msra.mxu0 %vm1886_vm14, %v1885_v22  ;;  %vm1068_vm14 = vcmp.ge.s32.totalorder %v252_v42, 64 }
 0x5a7   : > { %1892 = vmatprep.subr.bf16.mxu0 %v1891_v28 }
 0x5aa   : > { %1894 = vmatpush3.bf16.msra.mxu0 %v1891_v28 }
 0x5ab   : > { %1897 = vmatprep.subr.msk.bf16.mxu0 %vm1896_vm2, %v1895_v32 }
 0x5ae   : > { %1900 = vmatpush3.bf16.msk.msra.mxu0 %vm1896_vm2, %v1895_v32  ;;  %vm1069_vm2 = vcmp.lt.s32.totalorder %v252_v42, 144  ;;  %v1096_v42 = vsub.s32 2, %v2283_v58 }
 0x5b1   : > { %1822 = vmatmul.mubr.msk.f32.vlgmr.msra.gmra.mrb[6].mxu0 %vm908_vm10, %v874_v33  ;;  %vm1028_vm10 = vmand %vm2444_vm8, %vm2449_vm11 }
 0x5b2   : > { %1433 = vmatprep.mubr.f32.mxu0 %v2117_v29  ;;  %vm1046_vm8 = vmand %vm2468_vm7, %vm2473_vm4 }
 0x5b3   : > { %vm1070_vm11 = vmand %vm1068_vm14, %vm1069_vm2 }
 0x684   : > { %v1823_v34 = vpop.f32.mrb[6].mxu0 }
 0x685   : > { %994 = vst [vmem:[%s243_s8 + $0x8] sm:$0xf] %v1823_v34  ;;  %v984_v35 = vpop.f32.mrb[7].mxu0 }
 0x686   : > { %993 = vst [vmem:[%s243_s8] sm:$0xff] %v984_v35  ;;  %997 = vst.msk [vmem:[#allocation3] sm:$0x1] %vm995_vm0, %v984_v35  ;;  %v1005_v36 = vrot.slane %v984_v35, %v2286_v63  ;;  %v1048_v37 = vcombine.high %v984_v35, %v984_v35  ;;  %s1689_s8 = sshll.u32 %s2645_s19, 2 }
 0x687   : > { %vm1036_vm0 = vmand %vm2458_vm9, %vm2463_vm12 }
 0x688   : > { %v1006_v38 = vcombine.high %v1005_v36, %v1005_v36  ;;  %v1055_v40 = vrot.slane %v1048_v37, %v2286_v63  ;;  %v1013_v44 = vrot.slane %v1005_v36, %v2286_v63 }
 0x68a   : > { %v1020_v39 = vrot.slane %v1006_v38, %v2286_v63  ;;  %v1062_v45 = vrot.slane %v1055_v40, %v2286_v63  ;;  %v1030_v46 = vcombine.high %v1013_v44, %v1013_v44 }
 0x68c   : > { %1021 = vrot.lane.b32.xlu1 %v1020_v39, %s2123_s30  ;;  %v1038_v41 = vcombine.high %v1020_v39, %v1020_v39 }
 0x68e   : > { %1039 = vrot.lane.b32.xlu0 %v1038_v41, %s2118_s23 }
 0x690   : > { %1063 = vrot.lane.b32.xlu1 %v1062_v45, %s2124_s6 }
 0x692   : > { %1031 = vrot.lane.b32.xlu0 %v1030_v46, %s2125_s7  ;;  %s248_s7 = scalar_lea.vmem %s2624_s5, %s1689_s8 }
 0x6fe   : > { %v1022_v49 = vpop.permute.xlu1 %1021 }
 0x6ff   : > { %v1023_v50 = vrot.slane %v1022_v49, 7 }
 0x700   : > { %v1040_v52 = vpop.permute.xlu0 %1039 }
 0x701   : > { %v1024_v55 = vsel %vm694_vm6, %v1023_v50, %v1022_v49  ;;  %v1041_v56 = vrot.slane %v1040_v52, 7  ;;  %vm1124_vm6 = vcmask 15360  }
 0x702   : > { %v1064_v57 = vpop.permute.xlu1 %1063  ;;  %1029 = vst.msk [vmem:[#allocation3] sm:$0x3] %vm1028_vm10, %v1024_v55 }
 0x703   : > { %v1065_v59 = vrot.slane %v1064_v57, 7  ;;  %v1042_v61 = vsel %vm671_vm3, %v1041_v56, %v1040_v52  ;;  %vm1111_vm3 = vcmp.lt.s32.totalorder %v2497_v4, 192 }
 0x704   : > { %v1032_v60 = vpop.permute.xlu0 %1031  ;;  %vm1918_vm10 = vmpackc.low %vm1111_vm3, %vm1111_vm3 }
 0x705   : > { %v1066_v62 = vsel %vm655_vm15, %v1065_v59, %v1064_v57  ;;  %1037 = vst.msk [vmem:[#allocation3 + $0x1] sm:$0x1] %vm1036_vm0, %v1032_v60 }
 0x706   : > { %1047 = vst.msk [vmem:[#allocation3 + $0x1] sm:$0x3] %vm1046_vm8, %v1042_v61 }
 0x707   : > { %1071 = vst.msk [vmem:[#allocation3 + $0x2] sm:$0x3] %vm1070_vm11, %v1066_v62 }
 0x70d   : > { %v1072_v5 = vld [vmem:[#allocation3] sm:$0x3] }
 0x70e   : > { %v1073_v0 = vld [vmem:[#allocation3 + $0x1] sm:$0x7]  ;;  %v1082_v7 = vrot.slane %v1072_v5, %v2298_v12  ;;  %v1078_v13 = vrot.slane %v1072_v5, %v2295_v11 }
 0x70f   : > { %v1097_v1 = vrot.slane %v1073_v0, %v1096_v42  ;;  %v1093_v2 = vrot.slane %v1073_v0, %v2298_v12  ;;  %v1089_v3 = vrot.slane %v1073_v0, %v2295_v11  ;;  %v1118_v12 = vld [vmem:[%s2621_s2 + $0x40] sm:$0xff] }
 0x710   : > { %v1120_v11 = vld [vmem:[%s2622_s3] sm:$0xff] }
 0x711   : > { %1102 = vrot.lane.b32.xlu0 %v1097_v1, %s2124_s6  ;;  %1100 = vrot.lane.b32.xlu1 %v1093_v2, %s2124_s6  ;;  %v1243_v1 = vld [vmem:[%s2621_s2 + $0x50] sm:$0xff]  ;;  %v1244_v2 = vld [vmem:[%s2621_s2 + $0x58] sm:$0xff] }
 0x715   : > { %1098 = vrot.lane.b32.xlu1 %v1089_v3, %s2124_s6 }
 0x783   : > { %v1103_v6 = vpop.permute.xlu0 %1102  ;;  %v1101_v58 = vpop.permute.xlu1 %1100 }
 0x784   : > { %v1105_v8 = vsel %vm655_vm15, %v1101_v58, %v1103_v6 }
 0x785   : > { %v1109_v9 = vsel %vm697_vm13, %v1082_v7, %v1105_v8 }
 0x786   : > { %v1117_v10 = vsel %vm1111_vm3, %v1109_v9, 0.0 }
 0x787   : > { %1668 = vmatprep.subr.msk.mxu1 %vm258_vm1, %v1117_v10  ;;  %v1099_v14 = vpop.permute.xlu1 %1098 }
 0x788   : > { %v1104_v15 = vsel %vm655_vm15, %v1099_v14, %v1101_v58  ;;  %vm1245_vm15 = vcmask 400384  }
 0x789   : > { %v1108_v16 = vsel %vm697_vm13, %v1078_v13, %v1104_v15 }
 0x78a   : > { %1669 = vmatpush1.msk.msra.mxu1 %vm258_vm1, %v1108_v16  ;;  %vm1226_vm1 = vcmp.lt.s32.totalorder %v2269_v43, 16  ;;  %v1362_v43 = vld [vmem:[%s2621_s2 + $0x68] sm:$0xff] }
 0x78b   : > { %1670 = vmatmul.mubr.msk.f32.vlgmr.msra.gmra.mrb[2].mxu1 %vm1124_vm6, %v1118_v12 }
 0x78c   : > { %1207 = vmatprep.mubr.f32.mxu1 %v2117_v29 }
 0x78f   : > { %1671 = vmatmul.mubr.msk.f32.gmra.mrb[4].mxu1 %vm1124_vm6, %v1119_v18 }
 0x790   : > { %1316 = vmatprep.mubr.f32.mxu1 %v2117_v29 }
 0x85e   : > { %v1203_v20 = vpop.f32.mrb[2].mxu1 }
 0x85f   : > { %v1204_v21 = vadd.f32 %v1203_v20, %v1120_v11  ;;  %v1205_v22 = vpop.f32.mrb[3].mxu1 }
 0x860   : > { %v1206_v23 = vadd.f32 %v1205_v22, %v1121_v19 }
 0x861   : > { %2063 = vtanh.f32 %v1204_v21 }
 0x862   : > { %v1209_v26 = vpop.f32.mrb[4].mxu1  ;;  %2065 = vtanh.f32 %v1206_v23 }
 0x863   : > { %v1210_v27 = vadd.f32 %v1209_v26, %v1122_v24  ;;  %v1211_v28 = vpop.f32.mrb[5].mxu1 }
 0x864   : > { %v1212_v30 = vadd.f32 %v1211_v28, %v1123_v25 }
 0x865   : > { %2067 = vtanh.f32 %v1210_v27 }
 0x866   : > { %2069 = vtanh.f32 %v1212_v30 }
 0x86b   : > { %v2064_v31 = vpop.eup %2063 }
 0x86c   : > { %v2066_v32 = vpop.eup %2065 }
 0x86f   : > { %v2068_v33 = vpop.eup %2067 }
 0x870   : > { %v2070_v34 = vpop.eup %2069  ;;  %v2023_v35 = vpack.i.bf16 %v2068_v33, %v2064_v31  ;;  %v1907_v36 = vpack.c.bf16 %v2068_v33, %v2064_v31 }
 0x871   : > { %v2028_v37 = vpack.i.bf16 %v2070_v34, %v2066_v32  ;;  %v1905_v38 = vpack.c.bf16 %v2070_v34, %v2066_v32 }
 0x872   : > { %2024 = vrot.lane.b32.xlu0 %v2023_v35, %s2119_s24 }
 0x873   : > { %2029 = vrot.lane.b32.xlu1 %v2028_v37, %s2119_s24 }
 0x876   : > { %2034 = vrot.lane.b32.xlu0 %v2023_v35, %s2118_s23 }
 0x877   : > { %2039 = vrot.lane.b32.xlu1 %v2028_v37, %s2118_s23 }
 0x8e4   : > { %v2025_v39 = vpop.permute.xlu0 %2024 }
 0x8e5   : > { %v2027_v40 = vunpack.i.h.bf16 %v2025_v39  ;;  %v2026_v41 = vunpack.i.l.bf16 %v2025_v39  ;;  %v2030_v44 = vpop.permute.xlu1 %2029 }
 0x8e6   : > { %v2032_v45 = vunpack.i.h.bf16 %v2030_v44  ;;  %v2031_v46 = vunpack.i.l.bf16 %v2030_v44  ;;  %v1361_v44 = vld [vmem:[%s2621_s2 + $0x60] sm:$0xff] }
 0x8e8   : > { %v1229_v47 = vsel %vm1226_vm1, %v2031_v46, %v2026_v41  ;;  %v1230_v48 = vsel %vm1226_vm1, %v2032_v45, %v2027_v40  ;;  %v2035_v49 = vpop.permute.xlu0 %2034  ;;  %v1227_v50 = vsel %vm1226_vm1, %v2026_v41, %v2031_v46  ;;  %v1228_v63 = vsel %vm1226_vm1, %v2027_v40, %v2032_v45 }
 0x8e9   : > { %v1903_v51 = vpack.c.bf16 %v1230_v48, %v1229_v47  ;;  %v2037_v52 = vunpack.i.h.bf16 %v2035_v49  ;;  %v2036_v53 = vunpack.i.l.bf16 %v2035_v49  ;;  %v2040_v54 = vpop.permute.xlu1 %2039  ;;  %v1901_v55 = vpack.c.bf16 %v1228_v63, %v1227_v50 }
 0x8ea   : > { %v2042_v56 = vunpack.i.h.bf16 %v2040_v54  ;;  %v2041_v57 = vunpack.i.l.bf16 %v2040_v54 }
 0x8eb   : > { %1902 = vmatprep.subr.bf16.mxu1 %v1901_v55 }
 0x8ec   : > { %1904 = vmatpush1.bf16.msra.mxu1 %v1903_v51  ;;  %v1241_v59 = vsel %vm443_vm5, %v2041_v57, %v2036_v53  ;;  %v1242_v60 = vsel %vm443_vm5, %v2042_v56, %v2037_v52  ;;  %v1239_v61 = vsel %vm443_vm5, %v2036_v53, %v2041_v57  ;;  %v1240_v62 = vsel %vm443_vm5, %v2037_v52, %v2042_v56  ;;  %v1450_v53 = vld [vmem:[%s2621_s2 + $0x70] sm:$0x3] }
 0x8ed   : > { %1906 = vmatprep.subr.bf16.mxu1 %v1905_v38  ;;  %v1909_v42 = vpack.c.bf16 %v1242_v60, %v1241_v59  ;;  %v1911_v0 = vpack.c.bf16 %v1240_v62, %v1239_v61 }
 0x8f0   : > { %1908 = vmatpush1.bf16.msra.mxu1 %v1907_v36 }
 0x8f1   : > { %1910 = vmatprep.subr.bf16.mxu1 %v1909_v42 }
 0x8f4   : > { %1912 = vmatpush1.bf16.msra.mxu1 %v1911_v0 }
 0x8f5   : > { %1672 = vmatprep.subr.msk.mxu1 %vm697_vm13, %v2127_v17 }
 0x8f8   : > { %1673 = vmatpush1.msk.msra.mxu1 %vm697_vm13, %v2127_v17 }
 0x8f9   : > { %1674 = vmatmul.mubr.msk.f32.vlgmr.msra.gmra.mrb[6].mxu1 %vm1245_vm15, %v1243_v1 }
 0x8fa   : > { %1322 = vmatprep.mubr.f32.mxu1 %v2117_v29 }
 0x8fd   : > { %1675 = vmatmul.mubr.msk.f32.gmra.mrb[8].mxu1 %vm1245_vm15, %v1244_v2 }
 0x8fe   : > { %1519 = vmatprep.mubr.f32.mxu1 %v2117_v29 }
 0x9cc   : > { %v1318_v3 = vpop.f32.mrb[6].mxu1 }
 0x9cd   : > { %v1320_v5 = vpop.f32.mrb[7].mxu1  ;;  %2071 = vtanh.f32 %v1318_v3 }
 0x9ce   : > { %2073 = vtanh.f32 %v1320_v5 }
 0x9d0   : > { %v1324_v6 = vpop.f32.mrb[8].mxu1 }
 0x9d1   : > { %2075 = vtanh.f32 %v1324_v6  ;;  %v1326_v7 = vpop.f32.mrb[9].mxu1 }
 0x9d2   : > { %2077 = vtanh.f32 %v1326_v7 }
 0x9d7   : > { %v2072_v58 = vpop.eup %2071 }
 0x9d8   : > { %v2074_v8 = vpop.eup %2073 }
 0x9d9   : > { %v1334_v15 = vsel %vm1111_vm3, %v2074_v8, 0.0 }
 0x9db   : > { %v2076_v9 = vpop.eup %2075 }
 0x9dc   : > { %v2078_v10 = vpop.eup %2077  ;;  %v2043_v13 = vpack.i.bf16 %v2076_v9, %v2072_v58  ;;  %v1920_v14 = vpack.c.bf16 %v2076_v9, %v2072_v58 }
 0x9dd   : > { %v1336_v12 = vsel %vm1111_vm3, %v2078_v10, 0.0  ;;  %v1917_v16 = vpack.c.bf16 %v2078_v10, %v2074_v8 }
 0x9de   : > { %2044 = vrot.lane.b32.xlu0 %v2043_v13, %s2119_s24  ;;  %v2048_v18 = vpack.i.bf16 %v1336_v12, %v1334_v15 }
 0x9e0   : > { %2049 = vrot.lane.b32.xlu1 %v2048_v18, %s2119_s24 }
 0x9e2   : > { %2054 = vrot.lane.b32.xlu0 %v2043_v13, %s2118_s23 }
 0x9e4   : > { %2059 = vrot.lane.b32.xlu1 %v2048_v18, %s2118_s23 }
 0xa50   : > { %v2045_v11 = vpop.permute.xlu0 %2044 }
 0xa51   : > { %v2047_v20 = vunpack.i.h.bf16 %v2045_v11  ;;  %v2046_v21 = vunpack.i.l.bf16 %v2045_v11 }
 0xa52   : > { %v2050_v19 = vpop.permute.xlu1 %2049 }
 0xa53   : > { %v2052_v22 = vunpack.i.h.bf16 %v2050_v19  ;;  %v2051_v23 = vunpack.i.l.bf16 %v2050_v19 }
 0xa54   : > { %v2055_v26 = vpop.permute.xlu0 %2054 }
 0xa55   : > { %v1348_v24 = vsel %vm1226_vm1, %v2052_v22, %v2047_v20  ;;  %v1347_v25 = vsel %vm1226_vm1, %v2051_v23, %v2046_v21  ;;  %v1345_v30 = vsel %vm1226_vm1, %v2046_v21, %v2051_v23  ;;  %v1346_v31 = vsel %vm1226_vm1, %v2047_v20, %v2052_v22 }
 0xa56   : > { %v1915_v27 = vpack.c.bf16 %v1348_v24, %v1347_v25  ;;  %v2060_v28 = vpop.permute.xlu1 %2059  ;;  %v1913_v34 = vpack.c.bf16 %v1346_v31, %v1345_v30  ;;  %v2057_v35 = vunpack.i.h.bf16 %v2055_v26  ;;  %v2056_v36 = vunpack.i.l.bf16 %v2055_v26 }
 0xa57   : > { %v2062_v32 = vunpack.i.h.bf16 %v2060_v28  ;;  %v2061_v33 = vunpack.i.l.bf16 %v2060_v28 }
 0xa58   : > { %1914 = vmatprep.subr.bf16.mxu0 %v1913_v34 }
 0xa59   : > { %1916 = vmatpush1.bf16.msra.mxu0 %v1915_v27  ;;  %v1359_v37 = vsel %vm443_vm5, %v2061_v33, %v2056_v36  ;;  %v1360_v38 = vsel %vm443_vm5, %v2062_v32, %v2057_v35  ;;  %v1358_v39 = vsel %vm443_vm5, %v2057_v35, %v2062_v32  ;;  %v1357_v40 = vsel %vm443_vm5, %v2056_v36, %v2061_v33 }
 0xa5a   : > { %1919 = vmatprep.subr.msk.bf16.mxu0 %vm1918_vm10, %v1917_v16  ;;  %v1922_v41 = vpack.c.bf16 %v1360_v38, %v1359_v37  ;;  %v1924_v4 = vpack.c.bf16 %v1358_v39, %v1357_v40  ;;  %vm1451_vm5 = vcmask 138240  }
 0xa5d   : > { %1921 = vmatpush1.bf16.msra.mxu0 %v1920_v14 }
 0xa5e   : > { %1923 = vmatprep.subr.bf16.mxu0 %v1922_v41 }
 0xa61   : > { %1925 = vmatpush1.bf16.msra.mxu0 %v1924_v4 }
 0xa62   : > { %1678 = vmatprep.subr.msk.mxu0 %vm697_vm13, %v2127_v17 }
 0xa65   : > { %1679 = vmatpush1.msk.msra.mxu0 %vm697_vm13, %v2127_v17 }
 0xa66   : > { %1680 = vmatmul.mubr.msk.f32.vlgmr.msra.gmra.mrb[8].mxu0 %vm1245_vm15, %v1361_v44 }
 0xa67   : > { %1439 = vmatprep.mubr.f32.mxu0 %v2117_v29 }
 0xa6a   : > { %1681 = vmatmul.mubr.msk.f32.gmra.mrb[10].mxu0 %vm1245_vm15, %v1362_v43 }
 0xb39   : > { %v1435_v45 = vpop.f32.mrb[8].mxu0 }
 0xb3a   : > { %v1437_v46 = vpop.f32.mrb[9].mxu0  ;;  %2079 = vtanh.f32 %v1435_v45 }
 0xb3b   : > { %2081 = vtanh.f32 %v1437_v46 }
 0xb3d   : > { %v1441_v47 = vpop.f32.mrb[10].mxu0 }
 0xb3e   : > { %2083 = vtanh.f32 %v1441_v47  ;;  %v1443_v48 = vpop.f32.mrb[11].mxu0 }
 0xb3f   : > { %2085 = vtanh.f32 %v1443_v48 }
 0xb44   : > { %v2080_v49 = vpop.eup %2079 }
 0xb45   : > { %v2082_v50 = vpop.eup %2081 }
 0xb48   : > { %v2084_v63 = vpop.eup %2083 }
 0xb49   : > { %v2086_v51 = vpop.eup %2085  ;;  %v1928_v29 = vpack.c.bf16 %v2084_v63, %v2080_v49 }
 0xb4a   : > { %v1926_v52 = vpack.c.bf16 %v2086_v51, %v2082_v50 }
 0xb4c   : > { %1927 = vmatprep.subr.bf16.mxu1 %v1926_v52 }
 0xb4d   : > { %1929 = vmatpush1.bf16.msra.mxu1 %v1928_v29 }
 0xb4e   : > { %1682 = vmatprep.subr.msk.mxu1 %vm697_vm13, %v2127_v17 }
 0xb51   : > { %1683 = vmatpush1.msk.msra.mxu1 %vm697_vm13, %v2127_v17 }
 0xb52   : > { %1684 = vmatmul.mubr.msk.f32.vlgmr.msra.gmra.mrb[10].mxu1 %vm1451_vm5, %v1450_v53 }
 0xc25   : > { %v1521_v54 = vpop.f32.mrb[10].mxu1 }
 0xc26   : > { %v1523_v55 = vpop.f32.mrb[11].mxu1 }
 0xc27   : > { %v1528_v56 = vcombine.low %v1521_v54, %v1523_v55 }
 0xc29   : > { %1685 = vst.sshfl [vmem:[%s248_s7] sm:$0x33 pattern:$0x76325410] %v1528_v56 }
 0xc2a PF: > { %s17_s18 = sadd.s32 1, %s2112_s18  }
 0xc2b   : > { %p14_p1 = scmp.ge.s32.totalorder %s17_s18, 4  }
 0xc2d   :  { %16 = sbr.rel (!%p14_p1) target bundleno = 1 (0x1), region = 83 }
 0xc34   :  { %1575 = vsyncpa [#allocation5], 1 }
 0xc35   :  { %1577 = vsyncpa [#allocation5 + $0x1], 1 }

</bundles_post_ra>
